<compile_context>
chip_gen: v7x
topology: tpu7x:2x2x1
jax: 0.10.0
libtpu: 0.0.40
codegen_flags: <defaults>
</compile_context>

<pallas_src>
import functools
import math

import jax
import jax.numpy as jnp
from jax.experimental import pallas as pl
from jax.experimental.pallas import tpu as pltpu


# ----------------------------------------------------------------------------- utils
def _round_up(x, m):
    return ((x + m - 1) // m) * m


def _vmem_limit_bytes():
    """Per-generation scoped-VMEM budget: ~48 MiB on v7x (64 MiB physical),
    up to 96 MiB on v5e/v6e (128 MiB physical)."""
    cap = None
    try:
        cap = getattr(pltpu.get_tpu_info(), "vmem_capacity_bytes", None)
    except Exception:
        cap = None
    if not isinstance(cap, int) or cap <= 0:
        return 48 * 1024 * 1024  # safe fallback on every generation
    return min(cap * 3 // 4, 96 * 1024 * 1024)


_SQRT_HALF = 0.7071067811865476


def _erf_approx(z):
    # Abramowitz & Stegun 7.1.26 rational approximation, |err| < 1.5e-7.
    # TODO(synk): lax.erf has no Mosaic lowering; this surrogate matches torch's
    # exact (erf-based) GELU to ~1e-6.
    a1, a2, a3, a4, a5 = (0.254829592, -0.284496736, 1.421413741,
                          -1.453152027, 1.061405429)
    p = 0.3275911
    sign = jnp.where(z < 0.0, -1.0, 1.0)
    az = jnp.abs(z)
    t = 1.0 / (1.0 + p * az)
    poly = ((((a5 * t + a4) * t + a3) * t + a2) * t + a1) * t
    return sign * (1.0 - poly * jnp.exp(-az * az))


def _gelu_exactish(x):
    return 0.5 * x * (1.0 + _erf_approx(x * _SQRT_HALF))


# ----------------------------------------------------------------------- LayerNorm
def _ln_kernel(x_ref, g_ref, b_ref, o_ref, *, eps):
    # x_ref: (TM, H) tile; g/b: (1, H) resident (constant index_map -> single DMA).
    x = x_ref[...].astype(jnp.float32)
    mean = jnp.mean(x, axis=-1, keepdims=True)
    xc = x - mean
    var = jnp.mean(xc * xc, axis=-1, keepdims=True)
    inv = jax.lax.rsqrt(var + eps)
    y = xc * inv * g_ref[...].astype(jnp.float32) + b_ref[...].astype(jnp.float32)
    o_ref[...] = y.astype(o_ref.dtype)


def layernorm(x2d, gamma, beta, *, eps=1e-6, vmem_limit):
    M, H = x2d.shape
    tm = min(1024, _round_up(M, 8))
    return pl.pallas_call(
        functools.partial(_ln_kernel, eps=eps),
        out_shape=jax.ShapeDtypeStruct((M, H), x2d.dtype),
        grid_spec=pltpu.PrefetchScalarGridSpec(
            num_scalar_prefetch=0,
            grid=(pl.cdiv(M, tm),),
            in_specs=[
                pl.BlockSpec((tm, H), lambda i: (i, 0)),
                pl.BlockSpec((1, H), lambda i: (0, 0)),
                pl.BlockSpec((1, H), lambda i: (0, 0)),
            ],
            out_specs=pl.BlockSpec((tm, H), lambda i: (i, 0)),
        ),
        compiler_params=pltpu.CompilerParams(
            dimension_semantics=("parallel",),
            vmem_limit_bytes=vmem_limit,
        ),
    )(x2d, gamma.reshape(1, H), beta.reshape(1, H))


# ------------------------------------------------- Linear (full-K, fused epilogues)
def _linear_kernel(*refs, activation, has_residual, has_ln, eps):
    refs = list(refs)
    if has_ln:
        ln_o_ref = refs.pop()
    o_ref = refs.pop()
    it = iter(refs)
    x_ref = next(it)
    w_ref = next(it)
    b_ref = next(it)
    res_ref = next(it) if has_residual else None
    g_ref = next(it) if has_ln else None
    be_ref = next(it) if has_ln else None

    # Native-dtype operands on the MXU (bf16 stays bf16); f32 accumulation.
    y = jnp.dot(x_ref[...], w_ref[...], preferred_element_type=jnp.float32)
    y = y + b_ref[...].astype(jnp.float32)
    if activation == "gelu":
        y = _gelu_exactish(y)
    if has_residual:
        y = y + res_ref[...].astype(jnp.float32)
    o_ref[...] = y.astype(o_ref.dtype)

    if has_ln:
        # Fused LayerNorm epilogue over the full row (requires tn == N).
        mean = jnp.mean(y, axis=-1, keepdims=True)
        yc = y - mean
        var = jnp.mean(yc * yc, axis=-1, keepdims=True)
        inv = jax.lax.rsqrt(var + eps)
        ln_o_ref[...] = (yc * inv * g_ref[...].astype(jnp.float32)
                         + be_ref[...].astype(jnp.float32)).astype(ln_o_ref.dtype)


def linear(x, w, b, *, activation=None, residual=None, fused_ln=None, eps=1e-6,
           vmem_limit):
    """y = epilogue(x @ w + b); w is (in, out) layout.

    fused_ln=(gamma, beta): additionally return LayerNorm(y) as a second output
    (valid only when the output tile spans the full width N).
    """
    M, K = x.shape
    Kw, N = w.shape
    assert K == Kw and b.shape[-1] == N
    has_res = residual is not None
    has_ln = fused_ln is not None

    xb = x.dtype.itemsize
    wb = w.dtype.itemsize
    ob = x.dtype.itemsize
    rb = residual.dtype.itemsize if has_res else 0
    budget = max(vmem_limit - 4 * 1024 * 1024, 8 * 1024 * 1024)

    def need(tm, tn):
        n = 2 * tm * K * xb + 2 * K * tn * wb + 2 * tm * tn * ob
        if has_res:
            n += 2 * tm * tn * rb
        if has_ln:
            n += 2 * tm * tn * ob
        return n

    tm_max = _round_up(M, 8)
    tn_opts = [N] if has_ln else [N] + [t for t in (2048, 1024, 512, 256, 128) if t < N]
    tm, tn = 8, tn_opts[-1]
    found = False
    for tn_c in tn_opts:                       # prefer full-width (resident weight)
        for tm_c in (1024, 512, 256, 128, 64, 32, 16, 8):
            tm_c = min(tm_c, tm_max)
            if need(tm_c, tn_c) <= budget:
                tm, tn = tm_c, tn_c
                found = True
                break
        if found:
            break
    if has_ln:
        tn = N                                  # LN needs the whole row in one tile

    kernel = functools.partial(
        _linear_kernel, activation=activation, has_residual=has_res,
        has_ln=has_ln, eps=eps)

    in_specs = [
        pl.BlockSpec((tm, K), lambda j, i: (i, 0)),   # x: full-K rows
        pl.BlockSpec((K, tn), lambda j, i: (0, j)),   # weight: resident per j
        pl.BlockSpec((1, tn), lambda j, i: (0, j)),
    ]
    inputs = [x, w, b.reshape(1, N)]
    if has_res:
        in_specs.append(pl.BlockSpec((tm, tn), lambda j, i: (i, j)))
        inputs.append(residual)
    if has_ln:
        g, be = fused_ln
        in_specs.append(pl.BlockSpec((1, N), lambda j, i: (0, 0)))
        in_specs.append(pl.BlockSpec((1, N), lambda j, i: (0, 0)))
        inputs.extend([g.reshape(1, N), be.reshape(1, N)])

    out_spec = pl.BlockSpec((tm, tn), lambda j, i: (i, j))
    if has_ln:
        out_shape = (jax.ShapeDtypeStruct((M, N), x.dtype),
                     jax.ShapeDtypeStruct((M, N), x.dtype))
        out_specs = (out_spec, pl.BlockSpec((tm, tn), lambda j, i: (i, j)))
    else:
        out_shape = jax.ShapeDtypeStruct((M, N), x.dtype)
        out_specs = out_spec

    return pl.pallas_call(
        kernel,
        out_shape=out_shape,
        grid_spec=pltpu.PrefetchScalarGridSpec(
            num_scalar_prefetch=0,
            grid=(pl.cdiv(N, tn), pl.cdiv(M, tm)),   # weight index varies slowest
            in_specs=in_specs,
            out_specs=out_specs,
        ),
        compiler_params=pltpu.CompilerParams(
            dimension_semantics=("parallel", "parallel"),
            vmem_limit_bytes=vmem_limit,
        ),
    )(*inputs)


# ----------------------------------------------------------- attention core (B, NH grid)
def _attn_kernel(q_ref, k_ref, v_ref, o_ref, *, scale):
    # Blocks are (1, 1, S, dh): one (batch, head) per grid point.
    q = q_ref[0, 0]                                   # (S, dh), native dtype
    k = k_ref[0, 0]
    v = v_ref[0, 0]
    scores = jax.lax.dot_general(
        q, k, (((1,), (1,)), ((), ())),
        preferred_element_type=jnp.float32) * scale   # (S, S) f32
    m = jnp.max(scores, axis=-1, keepdims=True)
    p = jnp.exp(scores - m)
    denom = jnp.sum(p, axis=-1, keepdims=True)
    probs = p * pl.reciprocal(denom, approx=True)     # EUP reciprocal
    ctx = jnp.dot(probs.astype(v.dtype), v, preferred_element_type=jnp.float32)
    o_ref[0, 0] = ctx.astype(o_ref.dtype)
    # TODO(synk): for S >= ~512 switch to a KV-tiled online-softmax (flash)
    # formulation; the full (S,S) score tile is fine for ViT-sized sequences.


def attention_core(q, k, v, *, vmem_limit):
    """softmax(QK^T/sqrt(dh)) V per (batch, head); inputs are (B, NH, S, dh)."""
    B, NH, S, dh = q.shape
    scale = 1.0 / math.sqrt(dh)
    spec = pl.BlockSpec((1, 1, S, dh), lambda b, h: (b, h, 0, 0))
    return pl.pallas_call(
        functools.partial(_attn_kernel, scale=scale),
        out_shape=jax.ShapeDtypeStruct((B, NH, S, dh), q.dtype),
        grid_spec=pltpu.PrefetchScalarGridSpec(
            num_scalar_prefetch=0,
            grid=(B, NH),
            in_specs=[spec, spec, spec],
            out_specs=spec,
        ),
        compiler_params=pltpu.CompilerParams(
            dimension_semantics=("parallel", "parallel"),
            vmem_limit_bytes=vmem_limit,
        ),
    )(q, k, v)


# --------------------------------------------------------------- parameter folding
def fold_block_params(p):
    """Fold constant ChannelImportance scales into LN/weight params and fuse QKV."""
    return {
        "ln1_g": p["ln1_g"] * p["imp_ch"],
        "ln1_b": p["ln1_b"] * p["imp_ch"],
        "ln2_g": p["ln2_g"] * p["imp_mlp1"],
        "ln2_b": p["ln2_b"] * p["imp_mlp1"],
        "wqkv": jnp.concatenate([p["wq"], p["wk"], p["wv"]], axis=1),
        "bqkv": jnp.concatenate([p["bq"], p["bk"], p["bv"]]),
        "wo": p["wo"] * p["imp_ctx"][:, None],
        "bo": p["bo"],
        "w1": p["w1"], "b1": p["b1"],
        "w2": p["w2"] * p["imp_mlp2"][:, None],
        "b2": p["b2"],
    }


# ----------------------------------------------------------------------- Block forward
def vit_block_forward(x, fp, *, num_heads, eps=1e-6):
    """Forward of Block (eval mode) on folded params (see fold_block_params).

    Weights are stored (in_features, out_features), i.e. transposed torch layout.
    """
    B, S, H = x.shape
    M = B * S
    dh = H // num_heads
    vmem_limit = _vmem_limit_bytes()
    x2 = x.reshape(M, H)

    # ---- attention branch: LN1(+imp_ch folded) -> fused QKV -> MHA -> out proj ----
    ln1 = layernorm(x2, fp["ln1_g"], fp["ln1_b"], eps=eps, vmem_limit=vmem_limit)
    qkv = linear(ln1, fp["wqkv"], fp["bqkv"], vmem_limit=vmem_limit)       # (M, 3H)
    qkv4 = qkv.reshape(B, S, 3, num_heads, dh).transpose(2, 0, 3, 1, 4)    # (3,B,NH,S,dh)
    ctx = attention_core(qkv4[0], qkv4[1], qkv4[2], vmem_limit=vmem_limit)
    ctx2 = ctx.transpose(0, 2, 1, 3).reshape(M, H)
    # imp_ctx is folded into wo; residual add + LN2(+imp_mlp1) fused in the epilogue.
    attn_out, ln2 = linear(ctx2, fp["wo"], fp["bo"], residual=x2,
                           fused_ln=(fp["ln2_g"], fp["ln2_b"]), eps=eps,
                           vmem_limit=vmem_limit)

    # ---- MLP branch: fc1+gelu -> fc2(+imp_mlp2 folded) + residual ----
    f = linear(ln2, fp["w1"], fp["b1"], activation="gelu", vmem_limit=vmem_limit)
    out = linear(f, fp["w2"], fp["b2"], residual=attn_out, vmem_limit=vmem_limit)

    # TODO(synk): prune=True (stateful kthvalue mask caching) and visualize=True
    # (returning attention_probs) are not implemented; weights=None as in eval path.
    # TODO(synk): LN1 could be fused into the previous block's fc2 epilogue when
    # stacking blocks.
    return out.reshape(B, S, H), None


# -------------------------------------------------------------------- pure-JAX reference
def reference_block(x, p, *, num_heads, eps=1e-6):
    def ln(t, g, b):
        m = jnp.mean(t, axis=-1, keepdims=True)
        v = jnp.mean(jnp.square(t - m), axis=-1, keepdims=True)
        return (t - m) / jnp.sqrt(v + eps) * g + b

    B, S, H = x.shape
    dh = H // num_heads
    h = x
    y = ln(x, p["ln1_g"], p["ln1_b"]) * p["imp_ch"]
    q = y @ p["wq"] + p["bq"]
    k = y @ p["wk"] + p["bk"]
    v = y @ p["wv"] + p["bv"]

    def split(t):
        return t.reshape(B, S, num_heads, dh).transpose(0, 2, 1, 3)

    qh, kh, vh = split(q), split(k), split(v)
    scores = jnp.einsum("bhqd,bhkd->bhqk", qh, kh) / math.sqrt(dh)
    probs = jax.nn.softmax(scores, axis=-1)
    ctx = jnp.einsum("bhqk,bhkd->bhqd", probs, vh)
    ctx = ctx.transpose(0, 2, 1, 3).reshape(B, S, H) * p["imp_ctx"]
    x1 = ctx @ p["wo"] + p["bo"] + h

    y2 = ln(x1, p["ln2_g"], p["ln2_b"]) * p["imp_mlp1"]
    f = jax.nn.gelu(y2 @ p["w1"] + p["b1"], approximate=False) * p["imp_mlp2"]
    return f @ p["w2"] + p["b2"] + x1


# ------------------------------------------------------------------------------- demo
if __name__ == "__main__":
    B, S, H, NH, MLP = 2, 8, 128, 4, 256
    key = jax.random.PRNGKey(0)
    ks = jax.random.split(key, 21)

    def rnd(k, shape, scale):
        return scale * jax.random.normal(k, shape, dtype=jnp.float32)

    x = jax.random.normal(ks[0], (B, S, H), dtype=jnp.float32)
    params = {
        "ln1_g": 1.0 + rnd(ks[1], (H,), 0.1),
        "ln1_b": rnd(ks[2], (H,), 0.05),
        "imp_ch": 1.0 + rnd(ks[3], (H,), 0.05),   # ChannelImportance (attention input)
        "imp_ctx": 1.0 + rnd(ks[4], (H,), 0.05),  # ChannelImportance (context)
        "wq": rnd(ks[5], (H, H), 0.05), "bq": rnd(ks[6], (H,), 0.01),
        "wk": rnd(ks[7], (H, H), 0.05), "bk": rnd(ks[8], (H,), 0.01),
        "wv": rnd(ks[9], (H, H), 0.05), "bv": rnd(ks[10], (H,), 0.01),
        "wo": rnd(ks[11], (H, H), 0.05), "bo": rnd(ks[12], (H,), 0.01),
        "ln2_g": 1.0 + rnd(ks[13], (H,), 0.1),
        "ln2_b": rnd(ks[14], (H,), 0.05),
        "imp_mlp1": 1.0 + rnd(ks[15], (H,), 0.05),    # mlp_importance1
        "imp_mlp2": 1.0 + rnd(ks[16], (MLP,), 0.05),  # mlp_importance2
        "w1": rnd(ks[17], (H, MLP), 0.05), "b1": rnd(ks[18], (MLP,), 0.01),
        "w2": rnd(ks[19], (MLP, H), 0.05), "b2": rnd(ks[20], (H,), 0.01),
    }

    folded = fold_block_params(params)          # offline, zero runtime cost
    fwd = jax.jit(functools.partial(vit_block_forward, num_heads=NH))
    out, attn_weights = fwd(x, folded)
    out = jax.block_until_ready(out)

    ref = reference_block(x, params, num_heads=NH)
    assert out.shape == x.shape and out.dtype == x.dtype
    assert attn_weights is None  # visualize=False
    max_err = float(jnp.max(jnp.abs(out - ref)))
    # Tolerance accounts for the A&S erf surrogate (<1.5e-7) and the EUP approx
    # reciprocal in the softmax; a genuinely wrong kernel would be off by >>1e-2.
    assert max_err < 2e-3, f"max abs error {max_err}"

    print("KERNEL_OK")
</pallas_src>

<mosaic_0001>
module attributes {stable_mosaic.version = 11 : i64} {
  func.func @_linear_kernel(%arg0: i32, %arg1: i32, %arg2: memref<16x128xf32, #tpu.memory_space<vmem>>, %arg3: memref<128x384xf32, #tpu.memory_space<vmem>>, %arg4: memref<1x384xf32, #tpu.memory_space<vmem>>, %arg5: memref<16x384xf32, #tpu.memory_space<vmem>>) attributes {dimension_semantics = [#tpu.dimension_semantics<parallel>, #tpu.dimension_semantics<parallel>], iteration_bounds = array<i64: 1, 1>, scalar_prefetch = 0 : i64, scratch_operands = 0 : i64, tpu.core_type = #tpu.core_type<tc>, window_params = [{transform_indices = @transform_0, window_bounds = array<i64: 16, 128>}, {transform_indices = @transform_1, window_bounds = array<i64: 128, 384>}, {transform_indices = @transform_2, window_bounds = array<i64: 1, 384>}, {transform_indices = @transform_3, window_bounds = array<i64: 16, 384>}]} {
    %c0 = arith.constant 0 : index
    %c0_0 = arith.constant 0 : index
    %0 = vector.load %arg2[%c0, %c0_0] : memref<16x128xf32, #tpu.memory_space<vmem>>, vector<16x128xf32>
    %c0_1 = arith.constant 0 : index
    %c0_2 = arith.constant 0 : index
    %1 = vector.load %arg3[%c0_1, %c0_2] : memref<128x384xf32, #tpu.memory_space<vmem>>, vector<128x384xf32>
    %cst = arith.constant dense<0.000000e+00> : vector<16x384xf32>
    %2 = tpu.matmul %0, %1, %cst {dimension_numbers = #tpu.dot_dimension_numbers<[1], [0], [0], [1], [0, 0, 1, 1], [], []>} : vector<16x128xf32>, vector<128x384xf32>, vector<16x384xf32> -> vector<16x384xf32>
    %c0_3 = arith.constant 0 : index
    %c0_4 = arith.constant 0 : index
    %3 = vector.load %arg4[%c0_3, %c0_4] : memref<1x384xf32, #tpu.memory_space<vmem>>, vector<1x384xf32>
    %4 = vector.broadcast %3 : vector<1x384xf32> to vector<16x384xf32>
    %5 = arith.addf %2, %4 : vector<16x384xf32>
    %c0_5 = arith.constant 0 : index
    %c0_6 = arith.constant 0 : index
    %6 = vector.load %arg5[%c0_5, %c0_6] : memref<16x384xf32, #tpu.memory_space<vmem>>, vector<16x384xf32>
    tpu.vector_store %arg5[%c0_5, %c0_6], %5 {strides = array<i32>} : memref<16x384xf32, #tpu.memory_space<vmem>>, vector<16x384xf32>,
    return
  }
  func.func @transform_0(%arg0: i32, %arg1: i32) -> (i32, i32) {
    %c0_i32 = arith.constant 0 : i32
    %c0_i32_0 = arith.constant 0 : i32
    return %arg1, %c0_i32 : i32, i32
  }
  func.func @transform_1(%arg0: i32, %arg1: i32) -> (i32, i32) {
    %c0_i32 = arith.constant 0 : i32
    %c0_i32_0 = arith.constant 0 : i32
    return %c0_i32, %arg0 : i32, i32
  }
  func.func @transform_2(%arg0: i32, %arg1: i32) -> (i32, i32) {
    %c0_i32 = arith.constant 0 : i32
    %c0_i32_0 = arith.constant 0 : i32
    return %c0_i32, %arg0 : i32, i32
  }
  func.func @transform_3(%arg0: i32, %arg1: i32) -> (i32, i32) {
    %c0_i32 = arith.constant 0 : i32
    return %arg1, %arg0 : i32, i32
  }
}

module attributes {stable_mosaic.version = 11 : i64} {
  func.func @_ln_kernel(%arg0: i32, %arg1: memref<16x128xf32, #tpu.memory_space<vmem>>, %arg2: memref<1x128xf32, #tpu.memory_space<vmem>>, %arg3: memref<1x128xf32, #tpu.memory_space<vmem>>, %arg4: memref<16x128xf32, #tpu.memory_space<vmem>>) attributes {dimension_semantics = [#tpu.dimension_semantics<parallel>], iteration_bounds = array<i64: 1>, scalar_prefetch = 0 : i64, scratch_operands = 0 : i64, tpu.core_type = #tpu.core_type<tc>, window_params = [{transform_indices = @transform_0, window_bounds = array<i64: 16, 128>}, {pipeline_mode = #tpu.pipeline_mode<synchronous>, transform_indices = @transform_1, window_bounds = array<i64: 1, 128>}, {pipeline_mode = #tpu.pipeline_mode<synchronous>, transform_indices = @transform_2, window_bounds = array<i64: 1, 128>}, {transform_indices = @transform_3, window_bounds = array<i64: 16, 128>}]} {
    %c0 = arith.constant 0 : index
    %c0_0 = arith.constant 0 : index
    %0 = vector.load %arg1[%c0, %c0_0] : memref<16x128xf32, #tpu.memory_space<vmem>>, vector<16x128xf32>
    %cst = arith.constant dense<0.000000e+00> : vector<16xf32>
    %1 = vector.multi_reduction <add>, %0, %cst [1] : vector<16x128xf32> to vector<16xf32>
    %2 = vector.shape_cast %1 : vector<16xf32> to vector<16x1xf32>
    %cst_1 = arith.constant 1.280000e+02 : f32
    %3 = vector.broadcast %cst_1 : f32 to vector<16x1xf32>
    %4 = arith.divf %2, %3 : vector<16x1xf32>
    %5 = vector.broadcast %4 : vector<16x1xf32> to vector<16x128xf32>
    %6 = arith.subf %0, %5 : vector<16x128xf32>
    %7 = arith.mulf %6, %6 : vector<16x128xf32>
    %cst_2 = arith.constant dense<0.000000e+00> : vector<16xf32>
    %8 = vector.multi_reduction <add>, %7, %cst_2 [1] : vector<16x128xf32> to vector<16xf32>
    %9 = vector.shape_cast %8 : vector<16xf32> to vector<16x1xf32>
    %cst_3 = arith.constant 1.280000e+02 : f32
    %10 = vector.broadcast %cst_3 : f32 to vector<16x1xf32>
    %11 = arith.divf %9, %10 : vector<16x1xf32>
    %cst_4 = arith.constant 9.99999997E-7 : f32
    %12 = vector.broadcast %cst_4 : f32 to vector<16x1xf32>
    %13 = arith.addf %11, %12 : vector<16x1xf32>
    %14 = math.rsqrt %13 : vector<16x1xf32>
    %15 = vector.broadcast %14 : vector<16x1xf32> to vector<16x128xf32>
    %16 = arith.mulf %6, %15 : vector<16x128xf32>
    %c0_5 = arith.constant 0 : index
    %c0_6 = arith.constant 0 : index
    %17 = vector.load %arg2[%c0_5, %c0_6] : memref<1x128xf32, #tpu.memory_space<vmem>>, vector<1x128xf32>
    %18 = vector.broadcast %17 : vector<1x128xf32> to vector<16x128xf32>
    %19 = arith.mulf %16, %18 : vector<16x128xf32>
    %c0_7 = arith.constant 0 : index
    %c0_8 = arith.constant 0 : index
    %20 = vector.load %arg3[%c0_7, %c0_8] : memref<1x128xf32, #tpu.memory_space<vmem>>, vector<1x128xf32>
    %21 = vector.broadcast %20 : vector<1x128xf32> to vector<16x128xf32>
    %22 = arith.addf %19, %21 : vector<16x128xf32>
    %c0_9 = arith.constant 0 : index
    %c0_10 = arith.constant 0 : index
    %23 = vector.load %arg4[%c0_9, %c0_10] : memref<16x128xf32, #tpu.memory_space<vmem>>, vector<16x128xf32>
    tpu.vector_store %arg4[%c0_9, %c0_10], %22 {strides = array<i32>} : memref<16x128xf32, #tpu.memory_space<vmem>>, vector<16x128xf32>,
    return
  }
  func.func @transform_0(%arg0: i32) -> (i32, i32) {
    %c0_i32 = arith.constant 0 : i32
    %c0_i32_0 = arith.constant 0 : i32
    return %arg0, %c0_i32 : i32, i32
  }
  func.func @transform_1(%arg0: i32) -> (i32, i32) {
    %c0_i32 = arith.constant 0 : i32
    %c0_i32_0 = arith.constant 0 : i32
    %c0_i32_1 = arith.constant 0 : i32
    return %c0_i32, %c0_i32_0 : i32, i32
  }
  func.func @transform_2(%arg0: i32) -> (i32, i32) {
    %c0_i32 = arith.constant 0 : i32
    %c0_i32_0 = arith.constant 0 : i32
    %c0_i32_1 = arith.constant 0 : i32
    return %c0_i32, %c0_i32_0 : i32, i32
  }
  func.func @transform_3(%arg0: i32) -> (i32, i32) {
    %c0_i32 = arith.constant 0 : i32
    %c0_i32_0 = arith.constant 0 : i32
    return %arg0, %c0_i32 : i32, i32
  }
}

module attributes {stable_mosaic.version = 11 : i64} {
  func.func @_attn_kernel(%arg0: i32, %arg1: i32, %arg2: memref<1x1x8x32xf32, #tpu.memory_space<vmem>>, %arg3: memref<1x1x8x32xf32, #tpu.memory_space<vmem>>, %arg4: memref<1x1x8x32xf32, #tpu.memory_space<vmem>>, %arg5: memref<1x1x8x32xf32, #tpu.memory_space<vmem>>) attributes {dimension_semantics = [#tpu.dimension_semantics<parallel>, #tpu.dimension_semantics<parallel>], iteration_bounds = array<i64: 2, 4>, scalar_prefetch = 0 : i64, scratch_operands = 0 : i64, tpu.core_type = #tpu.core_type<tc>, window_params = [{transform_indices = @transform_0, window_bounds = array<i64: 1, 1, 8, 32>}, {transform_indices = @transform_1, window_bounds = array<i64: 1, 1, 8, 32>}, {transform_indices = @transform_2, window_bounds = array<i64: 1, 1, 8, 32>}, {transform_indices = @transform_3, window_bounds = array<i64: 1, 1, 8, 32>}]} {
    %c0 = arith.constant 0 : index
    %c0_0 = arith.constant 0 : index
    %c0_1 = arith.constant 0 : index
    %c0_2 = arith.constant 0 : index
    %0 = vector.load %arg2[%c0, %c0_0, %c0_1, %c0_2] : memref<1x1x8x32xf32, #tpu.memory_space<vmem>>, vector<1x1x8x32xf32>
    %1 = vector.shape_cast %0 : vector<1x1x8x32xf32> to vector<8x32xf32>
    %c0_3 = arith.constant 0 : index
    %c0_4 = arith.constant 0 : index
    %c0_5 = arith.constant 0 : index
    %c0_6 = arith.constant 0 : index
    %2 = vector.load %arg3[%c0_3, %c0_4, %c0_5, %c0_6] : memref<1x1x8x32xf32, #tpu.memory_space<vmem>>, vector<1x1x8x32xf32>
    %3 = vector.shape_cast %2 : vector<1x1x8x32xf32> to vector<8x32xf32>
    %c0_7 = arith.constant 0 : index
    %c0_8 = arith.constant 0 : index
    %c0_9 = arith.constant 0 : index
    %c0_10 = arith.constant 0 : index
    %4 = vector.load %arg4[%c0_7, %c0_8, %c0_9, %c0_10] : memref<1x1x8x32xf32, #tpu.memory_space<vmem>>, vector<1x1x8x32xf32>
    %5 = vector.shape_cast %4 : vector<1x1x8x32xf32> to vector<8x32xf32>
    %cst = arith.constant dense<0.000000e+00> : vector<8x8xf32>
    %6 = tpu.matmul %1, %3, %cst {dimension_numbers = #tpu.dot_dimension_numbers<[1], [1], [0], [0], [0, 0, 1, 0], [], []>} : vector<8x32xf32>, vector<8x32xf32>, vector<8x8xf32> -> vector<8x8xf32>
    %cst_11 = arith.constant 0.176776692 : f32
    %7 = vector.broadcast %cst_11 : f32 to vector<8x8xf32>
    %8 = arith.mulf %6, %7 : vector<8x8xf32>
    %cst_12 = arith.constant dense<0xFF800000> : vector<8xf32>
    %9 = vector.multi_reduction <maximumf>, %8, %cst_12 [1] : vector<8x8xf32> to vector<8xf32>
    %10 = vector.shape_cast %9 : vector<8xf32> to vector<8x1xf32>
    %11 = vector.broadcast %10 : vector<8x1xf32> to vector<8x8xf32>
    %12 = arith.subf %8, %11 : vector<8x8xf32>
    %13 = math.exp %12 : vector<8x8xf32>
    %cst_13 = arith.constant dense<0.000000e+00> : vector<8xf32>
    %14 = vector.multi_reduction <add>, %13, %cst_13 [1] : vector<8x8xf32> to vector<8xf32>
    %15 = vector.shape_cast %14 : vector<8xf32> to vector<8x1xf32>
    %16 = tpu.reciprocal %15 {approx = true} : vector<8x1xf32> -> vector<8x1xf32>
    %17 = vector.broadcast %16 : vector<8x1xf32> to vector<8x8xf32>
    %18 = arith.mulf %13, %17 : vector<8x8xf32>
    %cst_14 = arith.constant dense<0.000000e+00> : vector<8x32xf32>
    %19 = tpu.matmul %18, %5, %cst_14 {dimension_numbers = #tpu.dot_dimension_numbers<[1], [0], [0], [1], [0, 0, 1, 1], [], []>} : vector<8x8xf32>, vector<8x32xf32>, vector<8x32xf32> -> vector<8x32xf32>
    %c0_15 = arith.constant 0 : index
    %c0_16 = arith.constant 0 : index
    %c0_17 = arith.constant 0 : index
    %c0_18 = arith.constant 0 : index
    %20 = vector.load %arg5[%c0_15, %c0_16, %c0_17, %c0_18] : memref<1x1x8x32xf32, #tpu.memory_space<vmem>>, vector<1x1x8x32xf32>
    %21 = vector.shape_cast %20 : vector<1x1x8x32xf32> to vector<8x32xf32>
    %22 = vector.shape_cast %19 : vector<8x32xf32> to vector<1x1x8x32xf32>
    tpu.vector_store %arg5[%c0_15, %c0_16, %c0_17, %c0_18], %22 {strides = array<i32>} : memref<1x1x8x32xf32, #tpu.memory_space<vmem>>, vector<1x1x8x32xf32>,
    return
  }
  func.func @transform_0(%arg0: i32, %arg1: i32) -> (i32, i32, i32, i32) {
    %c0_i32 = arith.constant 0 : i32
    %c0_i32_0 = arith.constant 0 : i32
    %c0_i32_1 = arith.constant 0 : i32
    return %arg0, %arg1, %c0_i32, %c0_i32_0 : i32, i32, i32, i32
  }
  func.func @transform_1(%arg0: i32, %arg1: i32) -> (i32, i32, i32, i32) {
    %c0_i32 = arith.constant 0 : i32
    %c0_i32_0 = arith.constant 0 : i32
    %c0_i32_1 = arith.constant 0 : i32
    return %arg0, %arg1, %c0_i32, %c0_i32_0 : i32, i32, i32, i32
  }
  func.func @transform_2(%arg0: i32, %arg1: i32) -> (i32, i32, i32, i32) {
    %c0_i32 = arith.constant 0 : i32
    %c0_i32_0 = arith.constant 0 : i32
    %c0_i32_1 = arith.constant 0 : i32
    return %arg0, %arg1, %c0_i32, %c0_i32_0 : i32, i32, i32, i32
  }
  func.func @transform_3(%arg0: i32, %arg1: i32) -> (i32, i32, i32, i32) {
    %c0_i32 = arith.constant 0 : i32
    %c0_i32_0 = arith.constant 0 : i32
    %c0_i32_1 = arith.constant 0 : i32
    return %arg0, %arg1, %c0_i32, %c0_i32_0 : i32, i32, i32, i32
  }
}

module attributes {stable_mosaic.version = 11 : i64} {
  func.func @_linear_kernel(%arg0: i32, %arg1: i32, %arg2: memref<16x128xf32, #tpu.memory_space<vmem>>, %arg3: memref<128x128xf32, #tpu.memory_space<vmem>>, %arg4: memref<1x128xf32, #tpu.memory_space<vmem>>, %arg5: memref<16x128xf32, #tpu.memory_space<vmem>>, %arg6: memref<1x128xf32, #tpu.memory_space<vmem>>, %arg7: memref<1x128xf32, #tpu.memory_space<vmem>>, %arg8: memref<16x128xf32, #tpu.memory_space<vmem>>, %arg9: memref<16x128xf32, #tpu.memory_space<vmem>>) attributes {dimension_semantics = [#tpu.dimension_semantics<parallel>, #tpu.dimension_semantics<parallel>], iteration_bounds = array<i64: 1, 1>, scalar_prefetch = 0 : i64, scratch_operands = 0 : i64, tpu.core_type = #tpu.core_type<tc>, window_params = [{transform_indices = @transform_0, window_bounds = array<i64: 16, 128>}, {transform_indices = @transform_1, window_bounds = array<i64: 128, 128>}, {transform_indices = @transform_2, window_bounds = array<i64: 1, 128>}, {transform_indices = @transform_3, window_bounds = array<i64: 16, 128>}, {pipeline_mode = #tpu.pipeline_mode<synchronous>, transform_indices = @transform_4, window_bounds = array<i64: 1, 128>}, {pipeline_mode = #tpu.pipeline_mode<synchronous>, transform_indices = @transform_5, window_bounds = array<i64: 1, 128>}, {transform_indices = @transform_6, window_bounds = array<i64: 16, 128>}, {transform_indices = @transform_7, window_bounds = array<i64: 16, 128>}]} {
    %c0 = arith.constant 0 : index
    %c0_0 = arith.constant 0 : index
    %0 = vector.load %arg2[%c0, %c0_0] : memref<16x128xf32, #tpu.memory_space<vmem>>, vector<16x128xf32>
    %c0_1 = arith.constant 0 : index
    %c0_2 = arith.constant 0 : index
    %1 = vector.load %arg3[%c0_1, %c0_2] : memref<128x128xf32, #tpu.memory_space<vmem>>, vector<128x128xf32>
    %cst = arith.constant dense<0.000000e+00> : vector<16x128xf32>
    %2 = tpu.matmul %0, %1, %cst {dimension_numbers = #tpu.dot_dimension_numbers<[1], [0], [0], [1], [0, 0, 1, 1], [], []>} : vector<16x128xf32>, vector<128x128xf32>, vector<16x128xf32> -> vector<16x128xf32>
    %c0_3 = arith.constant 0 : index
    %c0_4 = arith.constant 0 : index
    %3 = vector.load %arg4[%c0_3, %c0_4] : memref<1x128xf32, #tpu.memory_space<vmem>>, vector<1x128xf32>
    %4 = vector.broadcast %3 : vector<1x128xf32> to vector<16x128xf32>
    %5 = arith.addf %2, %4 : vector<16x128xf32>
    %c0_5 = arith.constant 0 : index
    %c0_6 = arith.constant 0 : index
    %6 = vector.load %arg5[%c0_5, %c0_6] : memref<16x128xf32, #tpu.memory_space<vmem>>, vector<16x128xf32>
    %7 = arith.addf %5, %6 : vector<16x128xf32>
    %c0_7 = arith.constant 0 : index
    %c0_8 = arith.constant 0 : index
    %8 = vector.load %arg8[%c0_7, %c0_8] : memref<16x128xf32, #tpu.memory_space<vmem>>, vector<16x128xf32>
    tpu.vector_store %arg8[%c0_7, %c0_8], %7 {strides = array<i32>} : memref<16x128xf32, #tpu.memory_space<vmem>>, vector<16x128xf32>,
    %cst_9 = arith.constant dense<0.000000e+00> : vector<16xf32>
    %9 = vector.multi_reduction <add>, %7, %cst_9 [1] : vector<16x128xf32> to vector<16xf32>
    %10 = vector.shape_cast %9 : vector<16xf32> to vector<16x1xf32>
    %cst_10 = arith.constant 1.280000e+02 : f32
    %11 = vector.broadcast %cst_10 : f32 to vector<16x1xf32>
    %12 = arith.divf %10, %11 : vector<16x1xf32>
    %13 = vector.broadcast %12 : vector<16x1xf32> to vector<16x128xf32>
    %14 = arith.subf %7, %13 : vector<16x128xf32>
    %15 = arith.mulf %14, %14 : vector<16x128xf32>
    %cst_11 = arith.constant dense<0.000000e+00> : vector<16xf32>
    %16 = vector.multi_reduction <add>, %15, %cst_11 [1] : vector<16x128xf32> to vector<16xf32>
    %17 = vector.shape_cast %16 : vector<16xf32> to vector<16x1xf32>
    %cst_12 = arith.constant 1.280000e+02 : f32
    %18 = vector.broadcast %cst_12 : f32 to vector<16x1xf32>
    %19 = arith.divf %17, %18 : vector<16x1xf32>
    %cst_13 = arith.constant 9.99999997E-7 : f32
    %20 = vector.broadcast %cst_13 : f32 to vector<16x1xf32>
    %21 = arith.addf %19, %20 : vector<16x1xf32>
    %22 = math.rsqrt %21 : vector<16x1xf32>
    %23 = vector.broadcast %22 : vector<16x1xf32> to vector<16x128xf32>
    %24 = arith.mulf %14, %23 : vector<16x128xf32>
    %c0_14 = arith.constant 0 : index
    %c0_15 = arith.constant 0 : index
    %25 = vector.load %arg6[%c0_14, %c0_15] : memref<1x128xf32, #tpu.memory_space<vmem>>, vector<1x128xf32>
    %26 = vector.broadcast %25 : vector<1x128xf32> to vector<16x128xf32>
    %27 = arith.mulf %24, %26 : vector<16x128xf32>
    %c0_16 = arith.constant 0 : index
    %c0_17 = arith.constant 0 : index
    %28 = vector.load %arg7[%c0_16, %c0_17] : memref<1x128xf32, #tpu.memory_space<vmem>>, vector<1x128xf32>
    %29 = vector.broadcast %28 : vector<1x128xf32> to vector<16x128xf32>
    %30 = arith.addf %27, %29 : vector<16x128xf32>
    %c0_18 = arith.constant 0 : index
    %c0_19 = arith.constant 0 : index
    %31 = vector.load %arg9[%c0_18, %c0_19] : memref<16x128xf32, #tpu.memory_space<vmem>>, vector<16x128xf32>
    tpu.vector_store %arg9[%c0_18, %c0_19], %30 {strides = array<i32>} : memref<16x128xf32, #tpu.memory_space<vmem>>, vector<16x128xf32>,
    return
  }
  func.func @transform_0(%arg0: i32, %arg1: i32) -> (i32, i32) {
    %c0_i32 = arith.constant 0 : i32
    %c0_i32_0 = arith.constant 0 : i32
    return %arg1, %c0_i32 : i32, i32
  }
  func.func @transform_1(%arg0: i32, %arg1: i32) -> (i32, i32) {
    %c0_i32 = arith.constant 0 : i32
    %c0_i32_0 = arith.constant 0 : i32
    return %c0_i32, %arg0 : i32, i32
  }
  func.func @transform_2(%arg0: i32, %arg1: i32) -> (i32, i32) {
    %c0_i32 = arith.constant 0 : i32
    %c0_i32_0 = arith.constant 0 : i32
    return %c0_i32, %arg0 : i32, i32
  }
  func.func @transform_3(%arg0: i32, %arg1: i32) -> (i32, i32) {
    %c0_i32 = arith.constant 0 : i32
    return %arg1, %arg0 : i32, i32
  }
  func.func @transform_4(%arg0: i32, %arg1: i32) -> (i32, i32) {
    %c0_i32 = arith.constant 0 : i32
    %c0_i32_0 = arith.constant 0 : i32
    %c0_i32_1 = arith.constant 0 : i32
    return %c0_i32, %c0_i32_0 : i32, i32
  }
  func.func @transform_5(%arg0: i32, %arg1: i32) -> (i32, i32) {
    %c0_i32 = arith.constant 0 : i32
    %c0_i32_0 = arith.constant 0 : i32
    %c0_i32_1 = arith.constant 0 : i32
    return %c0_i32, %c0_i32_0 : i32, i32
  }
  func.func @transform_6(%arg0: i32, %arg1: i32) -> (i32, i32) {
    %c0_i32 = arith.constant 0 : i32
    return %arg1, %arg0 : i32, i32
  }
  func.func @transform_7(%arg0: i32, %arg1: i32) -> (i32, i32) {
    %c0_i32 = arith.constant 0 : i32
    return %arg1, %arg0 : i32, i32
  }
}

module attributes {stable_mosaic.version = 11 : i64} {
  func.func @_linear_kernel(%arg0: i32, %arg1: i32, %arg2: memref<16x128xf32, #tpu.memory_space<vmem>>, %arg3: memref<128x256xf32, #tpu.memory_space<vmem>>, %arg4: memref<1x256xf32, #tpu.memory_space<vmem>>, %arg5: memref<16x256xf32, #tpu.memory_space<vmem>>) attributes {dimension_semantics = [#tpu.dimension_semantics<parallel>, #tpu.dimension_semantics<parallel>], iteration_bounds = array<i64: 1, 1>, scalar_prefetch = 0 : i64, scratch_operands = 0 : i64, tpu.core_type = #tpu.core_type<tc>, window_params = [{transform_indices = @transform_0, window_bounds = array<i64: 16, 128>}, {transform_indices = @transform_1, window_bounds = array<i64: 128, 256>}, {transform_indices = @transform_2, window_bounds = array<i64: 1, 256>}, {transform_indices = @transform_3, window_bounds = array<i64: 16, 256>}]} {
    %c0 = arith.constant 0 : index
    %c0_0 = arith.constant 0 : index
    %0 = vector.load %arg2[%c0, %c0_0] : memref<16x128xf32, #tpu.memory_space<vmem>>, vector<16x128xf32>
    %c0_1 = arith.constant 0 : index
    %c0_2 = arith.constant 0 : index
    %1 = vector.load %arg3[%c0_1, %c0_2] : memref<128x256xf32, #tpu.memory_space<vmem>>, vector<128x256xf32>
    %cst = arith.constant dense<0.000000e+00> : vector<16x256xf32>
    %2 = tpu.matmul %0, %1, %cst {dimension_numbers = #tpu.dot_dimension_numbers<[1], [0], [0], [1], [0, 0, 1, 1], [], []>} : vector<16x128xf32>, vector<128x256xf32>, vector<16x256xf32> -> vector<16x256xf32>
    %c0_3 = arith.constant 0 : index
    %c0_4 = arith.constant 0 : index
    %3 = vector.load %arg4[%c0_3, %c0_4] : memref<1x256xf32, #tpu.memory_space<vmem>>, vector<1x256xf32>
    %4 = vector.broadcast %3 : vector<1x256xf32> to vector<16x256xf32>
    %5 = arith.addf %2, %4 : vector<16x256xf32>
    %cst_5 = arith.constant 5.000000e-01 : f32
    %6 = vector.broadcast %cst_5 : f32 to vector<16x256xf32>
    %7 = arith.mulf %6, %5 : vector<16x256xf32>
    %cst_6 = arith.constant 0.707106769 : f32
    %8 = vector.broadcast %cst_6 : f32 to vector<16x256xf32>
    %9 = arith.mulf %5, %8 : vector<16x256xf32>
    %cst_7 = arith.constant 0.000000e+00 : f32
    %10 = vector.broadcast %cst_7 : f32 to vector<16x256xf32>
    %11 = arith.cmpf olt, %9, %10 : vector<16x256xf32>
    %cst_8 = arith.constant -1.000000e+00 : f32
    %cst_9 = arith.constant 1.000000e+00 : f32
    %12 = vector.broadcast %cst_8 : f32 to vector<16x256xf32>
    %13 = vector.broadcast %cst_9 : f32 to vector<16x256xf32>
    %14 = arith.select %11, %12, %13 : vector<16x256xi1>, vector<16x256xf32>
    %15 = math.absf %9 : vector<16x256xf32>
    %cst_10 = arith.constant 0.327591091 : f32
    %16 = vector.broadcast %cst_10 : f32 to vector<16x256xf32>
    %17 = arith.mulf %16, %15 : vector<16x256xf32>
    %cst_11 = arith.constant 1.000000e+00 : f32
    %18 = vector.broadcast %cst_11 : f32 to vector<16x256xf32>
    %19 = arith.addf %18, %17 : vector<16x256xf32>
    %cst_12 = arith.constant 1.000000e+00 : f32
    %20 = vector.broadcast %cst_12 : f32 to vector<16x256xf32>
    %21 = arith.divf %20, %19 : vector<16x256xf32>
    %cst_13 = arith.constant 1.06140542 : f32
    %22 = vector.broadcast %cst_13 : f32 to vector<16x256xf32>
    %23 = arith.mulf %22, %21 : vector<16x256xf32>
    %cst_14 = arith.constant -1.45315206 : f32
    %24 = vector.broadcast %cst_14 : f32 to vector<16x256xf32>
    %25 = arith.addf %23, %24 : vector<16x256xf32>
    %26 = arith.mulf %25, %21 : vector<16x256xf32>
    %cst_15 = arith.constant 1.42141378 : f32
    %27 = vector.broadcast %cst_15 : f32 to vector<16x256xf32>
    %28 = arith.addf %26, %27 : vector<16x256xf32>
    %29 = arith.mulf %28, %21 : vector<16x256xf32>
    %cst_16 = arith.constant -0.284496725 : f32
    %30 = vector.broadcast %cst_16 : f32 to vector<16x256xf32>
    %31 = arith.addf %29, %30 : vector<16x256xf32>
    %32 = arith.mulf %31, %21 : vector<16x256xf32>
    %cst_17 = arith.constant 0.254829586 : f32
    %33 = vector.broadcast %cst_17 : f32 to vector<16x256xf32>
    %34 = arith.addf %32, %33 : vector<16x256xf32>
    %35 = arith.mulf %34, %21 : vector<16x256xf32>
    %cst_18 = arith.constant 0.000000e+00 : f32
    %36 = vector.broadcast %cst_18 : f32 to vector<16x256xf32>
    %37 = arith.subf %36, %15 : vector<16x256xf32>
    %38 = arith.mulf %37, %15 : vector<16x256xf32>
    %39 = math.exp %38 : vector<16x256xf32>
    %40 = arith.mulf %35, %39 : vector<16x256xf32>
    %cst_19 = arith.constant 1.000000e+00 : f32
    %41 = vector.broadcast %cst_19 : f32 to vector<16x256xf32>
    %42 = arith.subf %41, %40 : vector<16x256xf32>
    %43 = arith.mulf %14, %42 : vector<16x256xf32>
    %cst_20 = arith.constant 1.000000e+00 : f32
    %44 = vector.broadcast %cst_20 : f32 to vector<16x256xf32>
    %45 = arith.addf %44, %43 : vector<16x256xf32>
    %46 = arith.mulf %7, %45 : vector<16x256xf32>
    %c0_21 = arith.constant 0 : index
    %c0_22 = arith.constant 0 : index
    %47 = vector.load %arg5[%c0_21, %c0_22] : memref<16x256xf32, #tpu.memory_space<vmem>>, vector<16x256xf32>
    tpu.vector_store %arg5[%c0_21, %c0_22], %46 {strides = array<i32>} : memref<16x256xf32, #tpu.memory_space<vmem>>, vector<16x256xf32>,
    return
  }
  func.func @transform_0(%arg0: i32, %arg1: i32) -> (i32, i32) {
    %c0_i32 = arith.constant 0 : i32
    %c0_i32_0 = arith.constant 0 : i32
    return %arg1, %c0_i32 : i32, i32
  }
  func.func @transform_1(%arg0: i32, %arg1: i32) -> (i32, i32) {
    %c0_i32 = arith.constant 0 : i32
    %c0_i32_0 = arith.constant 0 : i32
    return %c0_i32, %arg0 : i32, i32
  }
  func.func @transform_2(%arg0: i32, %arg1: i32) -> (i32, i32) {
    %c0_i32 = arith.constant 0 : i32
    %c0_i32_0 = arith.constant 0 : i32
    return %c0_i32, %arg0 : i32, i32
  }
  func.func @transform_3(%arg0: i32, %arg1: i32) -> (i32, i32) {
    %c0_i32 = arith.constant 0 : i32
    return %arg1, %arg0 : i32, i32
  }
}

module attributes {stable_mosaic.version = 11 : i64} {
  func.func @_linear_kernel(%arg0: i32, %arg1: i32, %arg2: memref<16x256xf32, #tpu.memory_space<vmem>>, %arg3: memref<256x128xf32, #tpu.memory_space<vmem>>, %arg4: memref<1x128xf32, #tpu.memory_space<vmem>>, %arg5: memref<16x128xf32, #tpu.memory_space<vmem>>, %arg6: memref<16x128xf32, #tpu.memory_space<vmem>>) attributes {dimension_semantics = [#tpu.dimension_semantics<parallel>, #tpu.dimension_semantics<parallel>], iteration_bounds = array<i64: 1, 1>, scalar_prefetch = 0 : i64, scratch_operands = 0 : i64, tpu.core_type = #tpu.core_type<tc>, window_params = [{transform_indices = @transform_0, window_bounds = array<i64: 16, 256>}, {transform_indices = @transform_1, window_bounds = array<i64: 256, 128>}, {transform_indices = @transform_2, window_bounds = array<i64: 1, 128>}, {transform_indices = @transform_3, window_bounds = array<i64: 16, 128>}, {transform_indices = @transform_4, window_bounds = array<i64: 16, 128>}]} {
    %c0 = arith.constant 0 : index
    %c0_0 = arith.constant 0 : index
    %0 = vector.load %arg2[%c0, %c0_0] : memref<16x256xf32, #tpu.memory_space<vmem>>, vector<16x256xf32>
    %c0_1 = arith.constant 0 : index
    %c0_2 = arith.constant 0 : index
    %1 = vector.load %arg3[%c0_1, %c0_2] : memref<256x128xf32, #tpu.memory_space<vmem>>, vector<256x128xf32>
    %cst = arith.constant dense<0.000000e+00> : vector<16x128xf32>
    %2 = tpu.matmul %0, %1, %cst {dimension_numbers = #tpu.dot_dimension_numbers<[1], [0], [0], [1], [0, 0, 1, 1], [], []>} : vector<16x256xf32>, vector<256x128xf32>, vector<16x128xf32> -> vector<16x128xf32>
    %c0_3 = arith.constant 0 : index
    %c0_4 = arith.constant 0 : index
    %3 = vector.load %arg4[%c0_3, %c0_4] : memref<1x128xf32, #tpu.memory_space<vmem>>, vector<1x128xf32>
    %4 = vector.broadcast %3 : vector<1x128xf32> to vector<16x128xf32>
    %5 = arith.addf %2, %4 : vector<16x128xf32>
    %c0_5 = arith.constant 0 : index
    %c0_6 = arith.constant 0 : index
    %6 = vector.load %arg5[%c0_5, %c0_6] : memref<16x128xf32, #tpu.memory_space<vmem>>, vector<16x128xf32>
    %7 = arith.addf %5, %6 : vector<16x128xf32>
    %c0_7 = arith.constant 0 : index
    %c0_8 = arith.constant 0 : index
    %8 = vector.load %arg6[%c0_7, %c0_8] : memref<16x128xf32, #tpu.memory_space<vmem>>, vector<16x128xf32>
    tpu.vector_store %arg6[%c0_7, %c0_8], %7 {strides = array<i32>} : memref<16x128xf32, #tpu.memory_space<vmem>>, vector<16x128xf32>,
    return
  }
  func.func @transform_0(%arg0: i32, %arg1: i32) -> (i32, i32) {
    %c0_i32 = arith.constant 0 : i32
    %c0_i32_0 = arith.constant 0 : i32
    return %arg1, %c0_i32 : i32, i32
  }
  func.func @transform_1(%arg0: i32, %arg1: i32) -> (i32, i32) {
    %c0_i32 = arith.constant 0 : i32
    %c0_i32_0 = arith.constant 0 : i32
    return %c0_i32, %arg0 : i32, i32
  }
  func.func @transform_2(%arg0: i32, %arg1: i32) -> (i32, i32) {
    %c0_i32 = arith.constant 0 : i32
    %c0_i32_0 = arith.constant 0 : i32
    return %c0_i32, %arg0 : i32, i32
  }
  func.func @transform_3(%arg0: i32, %arg1: i32) -> (i32, i32) {
    %c0_i32 = arith.constant 0 : i32
    return %arg1, %arg0 : i32, i32
  }
  func.func @transform_4(%arg0: i32, %arg1: i32) -> (i32, i32) {
    %c0_i32 = arith.constant 0 : i32
    return %arg1, %arg0 : i32, i32
  }
}

</mosaic_0001>

<bundles_post_ra>
// kernel: vit_block_forward.6
= control target key start
LH: loop header
LB: loop body
LE: loop exit
PB: predicated region body
PF: predicated region fallthrough
CT: control target
= control target key end

     0   :  { %s107_s0 = inlined_call_operand.vmem [shape: f32[16,128], index: 0, kind: input, shape index: {}]   ;;  %s108_s1 = inlined_call_operand.vmem [shape: f32[1,128], index: 1, kind: input, shape index: {}]   ;;  %s109_s2 = inlined_call_operand.vmem [shape: f32[1,128], index: 2, kind: input, shape index: {}]   ;;  %s110_s3 = inlined_call_operand.vmem [shape: f32[16,128], index: 3, kind: output, shape index: {}]  }
   0x1   :  { %v14_v0 = vld [vmem:[%s107_s0] sm:$0xff]  ;;  %v15_v1 = vld [vmem:[%s107_s0 + $0x8] sm:$0xff] }
   0x2   :  { %16 = vadd.xlane.f32.xlu0 %v14_v0  ;;  %v63_v17 = vld [vmem:[%s108_s1] ss:$0 sm:$0xff] }
   0x3   :  { %v64_v19 = vld [vmem:[%s109_s2] ss:$0 sm:$0xff] }
   0x6   :  { %18 = vadd.xlane.f32.xlu0 %v15_v1 }
  0x8f   :  { %v17_v2 = vpop.xlane.xlu0 %16 }
  0x90   :  { %v21_v3 = vmul.f32 0.0078125, %v17_v2 }
  0x92   :  { %v23_v4 = vsub.f32 %v14_v0, %v21_v3 }
  0x93   :  { %v19_v5 = vpop.xlane.xlu0 %18 }
  0x94   :  { %v22_v6 = vmul.f32 0.0078125, %v19_v5  ;;  %v25_v7 = vmul.f32 %v23_v4, %v23_v4 }
  0x96   :  { %v24_v8 = vsub.f32 %v15_v1, %v22_v6  ;;  %27 = vadd.xlane.f32.xlu1 %v25_v7 }
  0x98   :  { %v26_v9 = vmul.f32 %v24_v8, %v24_v8 }
  0x9a   :  { %29 = vadd.xlane.f32.xlu1 %v26_v9 }
 0x123   :  { %v28_v10 = vpop.xlane.xlu1 %27 }
 0x124   :  { %v31_v11 = vmul.f32 0.0078125, %v28_v10 }
 0x126   :  { %v33_v12 = vadd.f32 1e-06, %v31_v11 }
 0x127   :  { %v30_v13 = vpop.xlane.xlu1 %29 }
 0x128   :  { %65 = vrsqrt.f32 %v33_v12  ;;  %v32_v14 = vmul.f32 0.0078125, %v30_v13 }
 0x12a   :  { %v34_v15 = vadd.f32 1e-06, %v32_v14 }
 0x12c   :  { %67 = vrsqrt.f32 %v34_v15 }
 0x132   :  { %v66_v16 = vpop.eup %65 }
 0x133   :  { %v37_v18 = vmul.f32 %v66_v16, %v23_v4 }
 0x135   :  { %v46_v20 = vmul.f32 %v63_v17, %v37_v18 }
 0x136   :  { %v68_v21 = vpop.eup %67 }
 0x137   :  { %v55_v22 = vadd.f32 %v64_v19, %v46_v20  ;;  %v38_v23 = vmul.f32 %v68_v21, %v24_v8 }
 0x139   :  { %57 = vst [vmem:[%s110_s3] sm:$0xff] %v55_v22  ;;  %v47_v24 = vmul.f32 %v63_v17, %v38_v23 }
 0x13b   :  { %v56_v25 = vadd.f32 %v64_v19, %v47_v24 }
 0x13d   :  { %58 = vst [vmem:[%s110_s3 + $0x8] sm:$0xff] %v56_v25 }

// kernel: vit_block_forward.7
= control target key start
LH: loop header
LB: loop body
LE: loop exit
PB: predicated region body
PF: predicated region fallthrough
CT: control target
= control target key end

     0   :  { %8 = vsyncpa [#allocation3], 0  ;;  %s403_s12 = smov [#allocation2]   ;;  %s468_s0 = inlined_call_operand.vmem [shape: f32[16,128], index: 0, kind: input, shape index: {}]   ;;  %s469_s1 = inlined_call_operand.hbm [shape: f32[128,384], index: 1, kind: input, shape index: {}]   ;;  %s470_s2 = inlined_call_operand.vmem [shape: f32[1,384], index: 2, kind: input, shape index: {}]   ;;  %s471_s3 = inlined_call_operand.vmem [shape: f32[16,384], index: 3, kind: output, shape index: {}]  }
   0x1   :  { %s16_s13 = sshll.u32 %s403_s12, 4  ;;  %s379_s16 = scalar_lea.hbm %s469_s1, 6144  ;;  %s17_s13 = int_to_ptr.vmem [resolvable:$true] %s16_s13 }
   0x2   :  { %p380_p0 = scmp.ne.s32.totalorder %s469_s1, %s379_s16  ;;  %p383_p1 = scmp.lt.u32.totalorder %s379_s16, %s469_s1 }
   0x4   :  { %p385_p2 = pnand %p383_p1, %p380_p0 }
   0x6   :  { %388 = shalt.err (!%p385_p2)
}
   0x7   :  { %s389_s21 = scalar_lea.vmem %s17_s13, 6144  ;;  %p394_p4 = scmp.lt.s32.totalorder %s17_s13, %s17_s13 }
   0x8   :  { %p390_p3 = scmp.ne.s32.totalorder %s17_s13, %s389_s21  ;;  %p395_p5 = scmp.lt.s32.totalorder %s389_s21, %s389_s21 }
   0xa   :  { %p396_p6 = por %p395_p5, %p394_p4 }
   0xc   :  { %p397_p7 = pnand %p396_p6, %p390_p3 }
   0xe   :  { %400 = shalt.err (!%p397_p7)
}
   0xf   :  { %s404_s22 = smov 384   ;;  %s405_s23 = smov 24  }
  0x10   :  { %22 = dma.hbm_to_vmem [thread:$0]  %s469_s1, 6144, %s17_s13, [#allocation3], %s404_s22, %s404_s22, %s405_s23  }
  0x11   :  { %401 = dma.done.wait [#allocation3], 6144  }
  0x12   :  { %402 = vsyncadd [#allocation3], 4294961152  ;;  %v406_v0 = vmov 0.0   ;;  %v31_v1 = vld [vmem:[#allocation2 + $0x8] sm:$0xff]  ;;  %v34_v2 = vld [vmem:[#allocation2 + $0x20] sm:$0xff] }
  0x13   :  { %159 = vmatprep.mubr.f32.mxu0 %v406_v0  ;;  %v30_v3 = vld [vmem:[#allocation2] sm:$0xff]  ;;  %v311_v4 = vpack.c.bf16 %v34_v2, %v31_v1  ;;  %v33_v5 = vld [vmem:[#allocation2 + $0x18] sm:$0xff]  ;;  %v32_v6 = vld [vmem:[#allocation2 + $0x10] sm:$0xff] }
  0x14   :  { %v35_v7 = vld [vmem:[#allocation2 + $0x28] sm:$0xff]  ;;  %v313_v8 = vpack.c.bf16 %v33_v5, %v30_v3  ;;  %v37_v10 = vld [vmem:[#allocation2 + $0x38] sm:$0xff]  ;;  %v40_v11 = vld [vmem:[#allocation2 + $0x50] sm:$0xff] }
  0x15   :  { %v343_v9 = vpack.c.bf16 %v35_v7, %v32_v6  ;;  %v36_v12 = vld [vmem:[#allocation2 + $0x30] sm:$0xff]  ;;  %312 = vmatprep.subr.bf16.mxu0 %v311_v4  ;;  %v315_v13 = vpack.c.bf16 %v40_v11, %v37_v10  ;;  %v39_v14 = vld [vmem:[#allocation2 + $0x48] sm:$0xff]  ;;  %v38_v15 = vld [vmem:[#allocation2 + $0x40] sm:$0xff] }
  0x16   :  { %v41_v16 = vld [vmem:[#allocation2 + $0x58] sm:$0xff]  ;;  %314 = vmatpush1.bf16.msra.mxu0 %v313_v8  ;;  %v317_v17 = vpack.c.bf16 %v39_v14, %v36_v12  ;;  %v43_v19 = vld [vmem:[#allocation2 + $0x68] sm:$0xff]  ;;  %v46_v20 = vld [vmem:[#allocation2 + $0x80] sm:$0xff]  ;;  %v80_v12 = vlaneseq }
  0x17   :  { %344 = vmatprep.subr.bf16.mxu1 %v343_v9  ;;  %v347_v18 = vpack.c.bf16 %v41_v16, %v38_v15  ;;  %v42_v21 = vld [vmem:[#allocation2 + $0x60] sm:$0xff]  ;;  %316 = vmatprep.subr.bf16.mxu0 %v315_v13  ;;  %v319_v22 = vpack.c.bf16 %v46_v20, %v43_v19  ;;  %v45_v23 = vld [vmem:[#allocation2 + $0x78] sm:$0xff]  ;;  %v44_v24 = vld [vmem:[#allocation2 + $0x70] sm:$0xff] }
  0x18   :  { %346 = vmatpush3.bf16.msra.mxu1 %v343_v9  ;;  %v47_v25 = vld [vmem:[#allocation2 + $0x88] sm:$0xff]  ;;  %v49_v27 = vld [vmem:[#allocation2 + $0x98] sm:$0xff]  ;;  %v52_v28 = vld [vmem:[#allocation2 + $0xb0] sm:$0xff]  ;;  %v321_v31 = vpack.c.bf16 %v45_v23, %v42_v21  ;;  %v81_v13 = vshrl.u32 %v80_v12, 7 }
  0x19   :  { %348 = vmatprep.subr.bf16.mxu1 %v347_v18  ;;  %v351_v26 = vpack.c.bf16 %v47_v25, %v44_v24  ;;  %v50_v29 = vld [vmem:[#allocation2 + $0xa0] sm:$0xff]  ;;  %v53_v30 = vld [vmem:[#allocation2 + $0xb8] sm:$0xff]  ;;  %v323_v32 = vpack.c.bf16 %v52_v28, %v49_v27  ;;  %v48_v33 = vld [vmem:[#allocation2 + $0x90] sm:$0xff] }
  0x1a   :  { %318 = vmatpush1.bf16.msra.mxu0 %v317_v17  ;;  %v51_v34 = vld [vmem:[#allocation2 + $0xa8] sm:$0xff]  ;;  %v355_v35 = vpack.c.bf16 %v53_v30, %v50_v29  ;;  %v58_v37 = vld [vmem:[#allocation2 + $0xe0] sm:$0xff]  ;;  %v56_v38 = vld [vmem:[#allocation2 + $0xd0] sm:$0xff]  ;;  %v82_v14 = vsub.s32 0, %v81_v13  ;;  %v86_v16 = vsub.s32 1, %v81_v13  ;;  %v90_v17 = vsub.s32 2, %v81_v13 }
  0x1b   :  { %320 = vmatprep.subr.bf16.mxu0 %v319_v22  ;;  %v55_v36 = vld [vmem:[#allocation2 + $0xc8] sm:$0xff]  ;;  %v325_v40 = vpack.c.bf16 %v51_v34, %v48_v33  ;;  %v54_v42 = vld [vmem:[#allocation2 + $0xc0] sm:$0xff]  ;;  %v57_v43 = vld [vmem:[#allocation2 + $0xd8] sm:$0xff] }
  0x1c   :  { %350 = vmatpush3.bf16.msra.mxu1 %v347_v18  ;;  %v59_v39 = vld [vmem:[#allocation2 + $0xe8] sm:$0xff]  ;;  %v327_v41 = vpack.c.bf16 %v58_v37, %v55_v36  ;;  %v61_v45 = vld [vmem:[#allocation2 + $0xf8] sm:$0xff]  ;;  %v64_v46 = vld [vmem:[#allocation2 + $0x110] sm:$0xff]  ;;  %v329_v49 = vpack.c.bf16 %v57_v43, %v54_v42 }
  0x1d   :  { %352 = vmatprep.subr.bf16.mxu1 %v351_v26  ;;  %v359_v44 = vpack.c.bf16 %v59_v39, %v56_v38  ;;  %v62_v47 = vld [vmem:[#allocation2 + $0x100] sm:$0xff]  ;;  %v65_v48 = vld [vmem:[#allocation2 + $0x118] sm:$0xff]  ;;  %v331_v50 = vpack.c.bf16 %v64_v46, %v61_v45  ;;  %v60_v51 = vld [vmem:[#allocation2 + $0xf0] sm:$0xff] }
  0x1e   :  { %322 = vmatpush1.bf16.msra.mxu0 %v321_v31  ;;  %v63_v52 = vld [vmem:[#allocation2 + $0x108] sm:$0xff]  ;;  %v28_v53 = vld [vmem:[%s468_s0] sm:$0xff]  ;;  %v363_v54 = vpack.c.bf16 %v65_v48, %v62_v47  ;;  %v68_v57 = vld [vmem:[#allocation2 + $0x130] sm:$0xff] }
  0x1f   :  { %324 = vmatprep.subr.bf16.mxu0 %v323_v32  ;;  %v67_v55 = vld [vmem:[#allocation2 + $0x128] sm:$0xff]  ;;  %v70_v56 = vld [vmem:[#allocation2 + $0x140] sm:$0xff]  ;;  %308 = vmatprep.mubr.f32.mxu1 %v28_v53  ;;  %v333_v59 = vpack.c.bf16 %v63_v52, %v60_v51  ;;  %v69_v62 = vld [vmem:[#allocation2 + $0x138] sm:$0xff] }
  0x20   :  { %354 = vmatpush3.bf16.msra.mxu1 %v351_v26  ;;  %v71_v58 = vld [vmem:[#allocation2 + $0x148] sm:$0xff]  ;;  %v335_v60 = vpack.c.bf16 %v70_v56, %v67_v55  ;;  %v66_v61 = vld [vmem:[#allocation2 + $0x120] sm:$0xff]  ;;  %v73_v1 = vld [vmem:[#allocation2 + $0x158] sm:$0xff] }
  0x21   :  { %356 = vmatprep.subr.bf16.mxu1 %v355_v35  ;;  %v367_v63 = vpack.c.bf16 %v71_v58, %v68_v57  ;;  %v76_v2 = vld [vmem:[#allocation2 + $0x170] sm:$0xff]  ;;  %v74_v3 = vld [vmem:[#allocation2 + $0x160] sm:$0xff]  ;;  %v77_v4 = vld [vmem:[#allocation2 + $0x178] sm:$0xff]  ;;  %v337_v5 = vpack.c.bf16 %v69_v62, %v66_v61 }
  0x22   :  { %326 = vmatpush1.bf16.msra.mxu0 %v325_v40  ;;  %v339_v6 = vpack.c.bf16 %v76_v2, %v73_v1  ;;  %v72_v7 = vld [vmem:[#allocation2 + $0x150] sm:$0xff]  ;;  %v75_v8 = vld [vmem:[#allocation2 + $0x168] sm:$0xff]  ;;  %v371_v9 = vpack.c.bf16 %v77_v4, %v74_v3  ;;  %v78_v15 = vld [vmem:[%s470_s2] sm:$0x7] }
  0x23   :  { %328 = vmatprep.subr.bf16.mxu0 %v327_v41  ;;  %v341_v10 = vpack.c.bf16 %v75_v8, %v72_v7  ;;  %v29_v11 = vld [vmem:[%s468_s0 + $0x8] sm:$0xff]  ;;  %v83_v18 = vrot.slane %v78_v15, %v82_v14  ;;  %v87_v19 = vrot.slane %v78_v15, %v86_v16  ;;  %v91_v20 = vrot.slane %v78_v15, %v90_v17 }
  0x24   :  { %358 = vmatpush3.bf16.msra.mxu1 %v355_v35 }
  0x25   :  { %360 = vmatprep.subr.bf16.mxu1 %v359_v44 }
  0x26   :  { %330 = vmatpush1.bf16.msra.mxu0 %v329_v49 }
  0x27   :  { %332 = vmatprep.subr.bf16.mxu0 %v331_v50 }
  0x28   :  { %362 = vmatpush3.bf16.msra.mxu1 %v359_v44 }
  0x29   :  { %364 = vmatprep.subr.bf16.mxu1 %v363_v54 }
  0x2a   :  { %334 = vmatpush1.bf16.msra.mxu0 %v333_v59 }
  0x2b   :  { %336 = vmatprep.subr.bf16.mxu0 %v335_v60 }
  0x2c   :  { %366 = vmatpush3.bf16.msra.mxu1 %v363_v54 }
  0x2d   :  { %368 = vmatprep.subr.bf16.mxu1 %v367_v63 }
  0x2e   :  { %338 = vmatpush1.bf16.msra.mxu0 %v337_v5 }
  0x2f   :  { %340 = vmatprep.subr.bf16.mxu0 %v339_v6 }
  0x30   :  { %370 = vmatpush3.bf16.msra.mxu1 %v367_v63 }
  0x31   :  { %372 = vmatprep.subr.bf16.mxu1 %v371_v9 }
  0x32   :  { %342 = vmatpush1.bf16.msra.mxu0 %v341_v10 }
  0x34   :  { %374 = vmatpush3.bf16.msra.mxu1 %v371_v9 }
  0x35   :  { %160 = vmatmul.mubr.f32.vlgmr.msra.gmra.mrb[0].mxu0 %v28_v53 }
  0x36   :  { %165 = vmatprep.mubr.f32.mxu0 %v406_v0 }
  0x37   :  { %309 = vmatmul.mubr.f32.vlgmr.msra.gmra.mrb[0].mxu1 %v29_v11 }
  0x39   :  { %166 = vmatmul.mubr.f32.gmra.mrb[2].mxu0 %v29_v11 }
 0x108   :  { %v161_v21 = vpop.f32.mrb[0].mxu0 }
 0x109   :  { %v162_v22 = vadd.f32 %v161_v21, %v83_v18  ;;  %v163_v23 = vpop.f32.mrb[1].mxu0 }
 0x10a   :  { %v310_v24 = vpop.f32.mrb[0].mxu1  ;;  %v164_v25 = vadd.f32 %v163_v23, %v87_v19 }
 0x10b   :  { %v244_v0 = vadd.f32 %v310_v24, %v91_v20  ;;  %v238_v26 = vpop.f32.mrb[1].mxu1  ;;  %247 = vst [vmem:[%s471_s3] sm:$0xff] %v162_v22 }
 0x10c   :  { %v239_v27 = vadd.f32 %v238_v26, %v91_v20  ;;  %248 = vst [vmem:[%s471_s3 + $0x8] sm:$0xff] %v164_v25  ;;  %v167_v28 = vpop.f32.mrb[2].mxu0 }
 0x10d   :  { %252 = vst [vmem:[%s471_s3 + $0x28] sm:$0xff] %v244_v0  ;;  %v168_v29 = vadd.f32 %v167_v28, %v83_v18  ;;  %v169_v30 = vpop.f32.mrb[3].mxu0 }
 0x10e   :  { %249 = vst [vmem:[%s471_s3 + $0x10] sm:$0xff] %v239_v27  ;;  %v170_v31 = vadd.f32 %v169_v30, %v87_v19 }
 0x10f   :  { %250 = vst [vmem:[%s471_s3 + $0x18] sm:$0xff] %v168_v29 }
 0x110   :  { %251 = vst [vmem:[%s471_s3 + $0x20] sm:$0xff] %v170_v31 }
 0x111   :  { %257 = vsyncpa [#allocation3], 1 }

// kernel: vit_block_forward.8
= control target key start
LH: loop header
LB: loop body
LE: loop exit
PB: predicated region body
PF: predicated region fallthrough
CT: control target
= control target key end

     0   :  { %s693_s12 = smov 0   ;;  %s695_s13 = smov 0   ;;  %s762_s0 = inlined_call_operand.vmem [shape: f32[2,4,8,32], index: 0, kind: input, shape index: {}]   ;;  %s763_s1 = inlined_call_operand.vmem [shape: f32[2,4,8,32], index: 1, kind: input, shape index: {}]   ;;  %s764_s2 = inlined_call_operand.vmem [shape: f32[2,4,8,32], index: 2, kind: input, shape index: {}]   ;;  %s765_s3 = inlined_call_operand.vmem [shape: f32[2,4,8,32], index: 3, kind: output, shape index: {}]  }
   0x1   :  { %s697_s14 = smov 0   ;;  %s699_s15 = smov 0  }
   0x2   :  { %s701_s16 = smov 0  }
   0x3 LB: > { %s22_s17 = sadd.s32 1, %s661_s14  ;;  %s25_s18 = sadd.s32 1, %s665_s15  ;;  %s669_s16 = sphi %s701_s16, %s13_s16   ;;  %s665_s15 = sphi %s699_s15, %s769_s15   ;;  %s661_s14 = sphi %s697_s14, %s768_s14   ;;  %s657_s13 = sphi %s695_s13, %s767_s13   ;;  %s653_s12 = sphi %s693_s12, %s766_s12  }
   0x4   : > { %p23_p0 = scmp.ge.s32.totalorder %s22_s17, 4  ;;  %p557_p1 = scmp.ge.s32.totalorder %s669_s16, 1 }
   0x5   : > { %p186_p2 = scmp.lt.s32.totalorder %s669_s16, 9 }
   0x6   : > { %s771_s17 = smov (%p23_p0, %s22_s17), 0  ;;  %s773_s18 = smov (!%p23_p0, %s25_s18), %s665_s15 }
   0x7   : > { %p187_p3 = pnand %p557_p1, %p186_p2  ;;  %p27_p4 = scmp.ge.s32.totalorder %s773_s18, 2 }
   0x8   : > { %p232_p5 = scmp.lt.s32.totalorder (!%p187_p3), %s657_s13, 1  ;;  %p234_p6 = scmp.lt.s32.totalorder (!%p187_p3), %s653_s12, 3  ;;  %v671_v0 = vmov (!%p187_p3), 0.0   ;;  %vm672_vm0 = vmmov (!%p187_p3), 0   ;;  %vm267_vm1 = vcmask (!%p187_p3), 261120   ;;  %vm345_vm2 = vcmask (!%p187_p3), 64512  }
   0x9   : > { %s775_s18 = smov (%p27_p4, %s773_s18), 0  ;;  %190 = sbr.rel (%p187_p3) target bundleno = 766 (0x2fe), region = 32 }
   0xa   : > { %575 = vmatprep.subr.mxu0 (!%p187_p3), %v671_v0  ;;  %577 = vmatprep.mubr.msk.f32.mxu0 (!%p187_p3), %vm672_vm0, %v671_v0 }
   0xb   : > { %580 = vmatprep.subr.mxu1 (!%p187_p3), %v671_v0  ;;  %582 = vmatprep.mubr.msk.f32.mxu1 (!%p187_p3), %vm672_vm0, %v671_v0 }
  0x10   : > { %s777_s13 = smov (!%p232_p5, %s657_s13), 1  ;;  %s779_s12 = smov (!%p234_p6, %s653_s12), 3 }
  0x11   : > { %s558_s19 = sshll.u32 %s777_s13, 2 }
  0x12   : > { %s237_s20 = sadd.s32 %s558_s19, %s779_s12 }
  0x13   : > { %s723_s21 = sshll.u32 %s237_s20, 3 }
  0x14   : > { %s247_s24 = scalar_lea.vmem %s763_s1, %s723_s21  ;;  %s239_s27 = scalar_lea.vmem %s762_s0, %s723_s21 }
  0x15   : > { %v265_v1 = vld [vmem:[%s247_s24] sm:$0xff]  ;;  %s255_s30 = scalar_lea.vmem %s764_s2, %s723_s21  ;;  %s263_s6 = scalar_lea.vmem %s765_s3, %s723_s21 }
  0x16   : > { %576 = vmatpush3.xpose.msk.msra.mxu0 %vm267_vm1, %v265_v1  ;;  %v264_v2 = vld [vmem:[%s239_s27] sm:$0xff] }
  0x17   : > { %v266_v12 = vld [vmem:[%s255_s30] sm:$0xff] }
  0x18   : > { %581 = vmatpush3.msra.mxu1 %v266_v12 }
  0x19   : > { %578 = vmatmul.mubr.msk.f32.vlgmr.msra.gmra.mrb[0].mxu0 %vm267_vm1, %v264_v2 }
  0xec   : > { %v340_v3 = vpop.f32.mrb[0].mxu0 }
  0xed   : > { %v344_v4 = vmul.f32 0.17677669, %v340_v3  ;;  %v579_v5 = vpop.f32.mrb[1].mxu0 }
  0xef   : > { %v346_v6 = vsel %vm345_vm2, %v344_v4, -inf }
  0xf0   : > { %347 = vmax.xlane.f32.xlu0 %v346_v6 }
 0x17d   : > { %v348_v7 = vpop.xlane.xlu0 %347 }
 0x17e   : > { %v349_v8 = vsub.f32 %v344_v4, %v348_v7 }
 0x180   : > { %v350_v9 = vmul.f32 1.442695, %v349_v8 }
 0x182   : > { %627 = vpow2.f32 %v350_v9 }
 0x18c   : > { %v628_v10 = vpop.eup %627 }
 0x18d   : > { %v352_v11 = vsel %vm345_vm2, %v628_v10, 0.0 }
 0x18e   : > { %353 = vadd.xlane.f32.xlu0 %v352_v11 }
 0x21b   : > { %v354_v13 = vpop.xlane.xlu0 %353 }
 0x21c   : > { %629 = vrcp.f32 %v354_v13 }
 0x226   : > { %v630_v14 = vpop.eup %629 }
 0x227   : > { %v356_v15 = vmul.f32 %v630_v14, %v628_v10 }
 0x229   : > { %583 = vmatmul.mubr.msk.f32.vlgmr.msra.gmra.mrb[0].mxu1 %vm345_vm2, %v356_v15 }
 0x2fc   : > { %v426_v16 = vpop.f32.mrb[0].mxu1 }
 0x2fd   : > { %430 = vst.msk [vmem:[%s263_s6] sm:$0xff] %vm267_vm1, %v426_v16  ;;  %v584_v17 = vpop.f32.mrb[1].mxu1 }
 0x2fe PF: > { %s13_s16 = sadd.s32 1, %s669_s16   ;;  %s766_s12 = smov %s661_s14 }
 0x2ff   : > { %p10_p7 = scmp.ge.s32.totalorder %s13_s16, 10   ;;  %s767_s13 = smov %s665_s15 }
 0x300   : > { %s768_s14 = smov %s771_s17  ;;  %s769_s15 = smov %s775_s18 }
 0x301   :  { %12 = sbr.rel (!%p10_p7) target bundleno = 3 (0x3), region = 68 }

// kernel: vit_block_forward.9
= control target key start
LH: loop header
LB: loop body
LE: loop exit
PB: predicated region body
PF: predicated region fallthrough
CT: control target
= control target key end

     0   :  { %s395_s1 = inlined_call_operand.vmem [shape: f32[128,128], index: 1, kind: input, shape index: {}]   ;;  %s396_s0 = inlined_call_operand.vmem [shape: f32[16,128], index: 0, kind: input, shape index: {}]   ;;  %s397_s2 = inlined_call_operand.vmem [shape: f32[1,128], index: 2, kind: input, shape index: {}]   ;;  %s398_s3 = inlined_call_operand.vmem [shape: f32[16,128], index: 3, kind: input, shape index: {}]   ;;  %s399_s6 = inlined_call_operand.vmem [shape: f32[16,128], index: 6, kind: output, shape index: {0}]   ;;  %s400_s4 = inlined_call_operand.vmem [shape: f32[1,128], index: 4, kind: input, shape index: {}]   ;;  %s401_s5 = inlined_call_operand.vmem [shape: f32[1,128], index: 5, kind: input, shape index: {}]   ;;  %s402_s7 = inlined_call_operand.vmem [shape: f32[16,128], index: 7, kind: output, shape index: {1}]  }
   0x1   :  { %v27_v0 = vld [vmem:[%s395_s1] sm:$0xff]  ;;  %v28_v1 = vld [vmem:[%s395_s1 + $0x8] sm:$0xff]  ;;  %v29_v2 = vld [vmem:[%s395_s1 + $0x10] sm:$0xff] }
   0x2   :  { %v238_v3 = vpack.c.bf16 %v28_v1, %v27_v0  ;;  %v30_v4 = vld [vmem:[%s395_s1 + $0x18] sm:$0xff]  ;;  %v31_v6 = vld [vmem:[%s395_s1 + $0x20] sm:$0xff]  ;;  %v32_v7 = vld [vmem:[%s395_s1 + $0x28] sm:$0xff] }
   0x3   :  { %v242_v5 = vpack.c.bf16 %v30_v4, %v29_v2  ;;  %v246_v8 = vpack.c.bf16 %v32_v7, %v31_v6  ;;  %v25_v9 = vld [vmem:[%s396_s0] sm:$0xff]  ;;  %v33_v10 = vld [vmem:[%s395_s1 + $0x30] sm:$0xff]  ;;  %v34_v11 = vld [vmem:[%s395_s1 + $0x38] sm:$0xff] }
   0x4   :  { %239 = vmatprep.subr.bf16.mxu0 %v238_v3  ;;  %235 = vmatprep.mubr.f32.mxu0 %v25_v9  ;;  %v250_v12 = vpack.c.bf16 %v34_v11, %v33_v10  ;;  %v35_v13 = vld [vmem:[%s395_s1 + $0x40] sm:$0xff]  ;;  %v36_v14 = vld [vmem:[%s395_s1 + $0x48] sm:$0xff]  ;;  %v37_v16 = vld [vmem:[%s395_s1 + $0x50] sm:$0xff] }
   0x5   :  { %241 = vmatpush3.bf16.msra.mxu0 %v238_v3  ;;  %v254_v15 = vpack.c.bf16 %v36_v14, %v35_v13  ;;  %v38_v17 = vld [vmem:[%s395_s1 + $0x58] sm:$0xff]  ;;  %v39_v19 = vld [vmem:[%s395_s1 + $0x60] sm:$0xff]  ;;  %v40_v20 = vld [vmem:[%s395_s1 + $0x68] sm:$0xff] }
   0x6   :  { %243 = vmatprep.subr.bf16.mxu0 %v242_v5  ;;  %v258_v18 = vpack.c.bf16 %v38_v17, %v37_v16  ;;  %v262_v21 = vpack.c.bf16 %v40_v20, %v39_v19  ;;  %v41_v22 = vld [vmem:[%s395_s1 + $0x70] sm:$0xff]  ;;  %v42_v23 = vld [vmem:[%s395_s1 + $0x78] sm:$0xff]  ;;  %v26_v25 = vld [vmem:[%s396_s0 + $0x8] sm:$0xff] }
   0x7   :  { %v266_v24 = vpack.c.bf16 %v42_v23, %v41_v22  ;;  %v182_v26 = vld [vmem:[%s397_s2] ss:$0 sm:$0xff]  ;;  %v126_v28 = vld [vmem:[%s398_s3 + $0x8] sm:$0xff] }
   0x8   :  { %v125_v31 = vld [vmem:[%s398_s3] sm:$0xff] }
   0x9   :  { %245 = vmatpush3.bf16.msra.mxu0 %v242_v5  ;;  %v183_v50 = vld [vmem:[%s400_s4] ss:$0 sm:$0xff] }
   0xa   :  { %247 = vmatprep.subr.bf16.mxu0 %v246_v8  ;;  %v184_v52 = vld [vmem:[%s401_s5] ss:$0 sm:$0xff] }
   0xd   :  { %249 = vmatpush3.bf16.msra.mxu0 %v246_v8 }
   0xe   :  { %251 = vmatprep.subr.bf16.mxu0 %v250_v12 }
  0x11   :  { %253 = vmatpush3.bf16.msra.mxu0 %v250_v12 }
  0x12   :  { %255 = vmatprep.subr.bf16.mxu0 %v254_v15 }
  0x15   :  { %257 = vmatpush3.bf16.msra.mxu0 %v254_v15 }
  0x16   :  { %259 = vmatprep.subr.bf16.mxu0 %v258_v18 }
  0x19   :  { %261 = vmatpush3.bf16.msra.mxu0 %v258_v18 }
  0x1a   :  { %263 = vmatprep.subr.bf16.mxu0 %v262_v21 }
  0x1d   :  { %265 = vmatpush3.bf16.msra.mxu0 %v262_v21 }
  0x1e   :  { %267 = vmatprep.subr.bf16.mxu0 %v266_v24 }
  0x21   :  { %269 = vmatpush3.bf16.msra.mxu0 %v266_v24 }
  0x24   :  { %236 = vmatmul.mubr.f32.vlgmr.msra.gmra.mrb[0].mxu0 %v26_v25 }
  0xf7   :  { %v237_v27 = vpop.f32.mrb[0].mxu0 }
  0xf8   :  { %v122_v29 = vadd.f32 %v237_v27, %v182_v26  ;;  %v116_v30 = vpop.f32.mrb[1].mxu0 }
  0xf9   :  { %v117_v32 = vadd.f32 %v182_v26, %v116_v30 }
  0xfa   :  { %v128_v33 = vadd.f32 %v126_v28, %v122_v29 }
  0xfb   :  { %v127_v34 = vadd.f32 %v125_v31, %v117_v32 }
  0xfc   :  { %130 = vst [vmem:[%s399_s6 + $0x8] sm:$0xff] %v128_v33 }
  0xfd   :  { %129 = vst [vmem:[%s399_s6] sm:$0xff] %v127_v34  ;;  %131 = vadd.xlane.f32.xlu0 %v127_v34 }
 0x101   :  { %133 = vadd.xlane.f32.xlu0 %v128_v33 }
 0x18a   :  { %v132_v35 = vpop.xlane.xlu0 %131 }
 0x18b   :  { %v136_v36 = vmul.f32 0.0078125, %v132_v35 }
 0x18d   :  { %v138_v37 = vsub.f32 %v127_v34, %v136_v36 }
 0x18e   :  { %v134_v38 = vpop.xlane.xlu0 %133 }
 0x18f   :  { %v137_v39 = vmul.f32 0.0078125, %v134_v38  ;;  %v140_v40 = vmul.f32 %v138_v37, %v138_v37 }
 0x191   :  { %v139_v41 = vsub.f32 %v128_v33, %v137_v39  ;;  %142 = vadd.xlane.f32.xlu1 %v140_v40 }
 0x193   :  { %v141_v42 = vmul.f32 %v139_v41, %v139_v41 }
 0x195   :  { %144 = vadd.xlane.f32.xlu1 %v141_v42 }
 0x21e   :  { %v143_v43 = vpop.xlane.xlu1 %142 }
 0x21f   :  { %v146_v44 = vmul.f32 0.0078125, %v143_v43 }
 0x221   :  { %v148_v45 = vadd.f32 1e-06, %v146_v44 }
 0x222   :  { %v145_v46 = vpop.xlane.xlu1 %144 }
 0x223   :  { %270 = vrsqrt.f32 %v148_v45  ;;  %v147_v47 = vmul.f32 0.0078125, %v145_v46 }
 0x225   :  { %v149_v48 = vadd.f32 1e-06, %v147_v47 }
 0x227   :  { %272 = vrsqrt.f32 %v149_v48 }
 0x22d   :  { %v271_v49 = vpop.eup %270 }
 0x22e   :  { %v152_v51 = vmul.f32 %v271_v49, %v138_v37 }
 0x230   :  { %v161_v53 = vmul.f32 %v183_v50, %v152_v51 }
 0x231   :  { %v273_v54 = vpop.eup %272 }
 0x232   :  { %v170_v55 = vadd.f32 %v184_v52, %v161_v53  ;;  %v153_v56 = vmul.f32 %v273_v54, %v139_v41 }
 0x234   :  { %172 = vst [vmem:[%s402_s7] sm:$0xff] %v170_v55  ;;  %v162_v57 = vmul.f32 %v183_v50, %v153_v56 }
 0x236   :  { %v171_v58 = vadd.f32 %v184_v52, %v162_v57 }
 0x238   :  { %173 = vst [vmem:[%s402_s7 + $0x8] sm:$0xff] %v171_v58 }

// kernel: vit_block_forward.10
= control target key start
LH: loop header
LB: loop body
LE: loop exit
PB: predicated region body
PF: predicated region fallthrough
CT: control target
= control target key end

     0   :  { %v319_v3 = vmov 0.0   ;;  %v50_v51 = vlaneseq  ;;  %s490_s1 = inlined_call_operand.vmem [shape: f32[128,256], index: 1, kind: input, shape index: {}]   ;;  %s491_s0 = inlined_call_operand.vmem [shape: f32[16,128], index: 0, kind: input, shape index: {}]   ;;  %s492_s2 = inlined_call_operand.vmem [shape: f32[1,256], index: 2, kind: input, shape index: {}]   ;;  %s493_s3 = inlined_call_operand.vmem [shape: f32[16,256], index: 3, kind: output, shape index: {}]  }
   0x1   :  { %v17_v0 = vld [vmem:[%s490_s1 + $0x8] sm:$0xff]  ;;  %v19_v1 = vld [vmem:[%s490_s1 + $0x18] sm:$0xff]  ;;  %v16_v2 = vld [vmem:[%s490_s1] sm:$0xff]  ;;  %124 = vmatprep.mubr.f32.mxu0 %v319_v3  ;;  %130 = vmatprep.mubr.f32.mxu1 %v319_v3 }
   0x2   :  { %v253_v4 = vpack.c.bf16 %v19_v1, %v17_v0  ;;  %v18_v5 = vld [vmem:[%s490_s1 + $0x10] sm:$0xff]  ;;  %v21_v6 = vld [vmem:[%s490_s1 + $0x28] sm:$0xff]  ;;  %v23_v7 = vld [vmem:[%s490_s1 + $0x38] sm:$0xff]  ;;  %v51_v52 = vshrl.u32 %v50_v51, 7 }
   0x3   :  { %v255_v8 = vpack.c.bf16 %v18_v5, %v16_v2  ;;  %v257_v9 = vpack.c.bf16 %v23_v7, %v21_v6  ;;  %v20_v10 = vld [vmem:[%s490_s1 + $0x20] sm:$0xff]  ;;  %v22_v11 = vld [vmem:[%s490_s1 + $0x30] sm:$0xff]  ;;  %v25_v12 = vld [vmem:[%s490_s1 + $0x48] sm:$0xff] }
   0x4   :  { %254 = vmatprep.subr.bf16.mxu0 %v253_v4  ;;  %285 = vmatprep.subr.bf16.mxu1 %v253_v4  ;;  %v27_v13 = vld [vmem:[%s490_s1 + $0x58] sm:$0xff]  ;;  %v259_v14 = vpack.c.bf16 %v22_v11, %v20_v10  ;;  %v24_v16 = vld [vmem:[%s490_s1 + $0x40] sm:$0xff]  ;;  %v26_v17 = vld [vmem:[%s490_s1 + $0x50] sm:$0xff]  ;;  %v52_v53 = vsub.s32 0, %v51_v52  ;;  %v56_v55 = vsub.s32 1, %v51_v52 }
   0x5   :  { %256 = vmatpush1.bf16.msra.mxu0 %v255_v8  ;;  %293 = vmatpush1.bf16.msra.mxu1 %v255_v8  ;;  %v261_v15 = vpack.c.bf16 %v27_v13, %v25_v12  ;;  %v29_v18 = vld [vmem:[%s490_s1 + $0x68] sm:$0xff]  ;;  %v31_v19 = vld [vmem:[%s490_s1 + $0x78] sm:$0xff]  ;;  %v263_v20 = vpack.c.bf16 %v26_v17, %v24_v16  ;;  %v28_v22 = vld [vmem:[%s490_s1 + $0x60] sm:$0xff] }
   0x6   :  { %258 = vmatprep.subr.bf16.mxu0 %v257_v9  ;;  %286 = vmatprep.subr.bf16.mxu1 %v257_v9  ;;  %v265_v21 = vpack.c.bf16 %v31_v19, %v29_v18  ;;  %v30_v23 = vld [vmem:[%s490_s1 + $0x70] sm:$0xff]  ;;  %v33_v24 = vld [vmem:[%s490_s1 + $0x88] sm:$0xff]  ;;  %v35_v25 = vld [vmem:[%s490_s1 + $0x98] sm:$0xff] }
   0x7   :  { %v267_v26 = vpack.c.bf16 %v30_v23, %v28_v22  ;;  %v269_v27 = vpack.c.bf16 %v35_v25, %v33_v24  ;;  %v32_v28 = vld [vmem:[%s490_s1 + $0x80] sm:$0xff]  ;;  %v34_v29 = vld [vmem:[%s490_s1 + $0x90] sm:$0xff]  ;;  %v37_v30 = vld [vmem:[%s490_s1 + $0xa8] sm:$0xff] }
   0x8   :  { %v39_v31 = vld [vmem:[%s490_s1 + $0xb8] sm:$0xff]  ;;  %v271_v32 = vpack.c.bf16 %v34_v29, %v32_v28  ;;  %v36_v34 = vld [vmem:[%s490_s1 + $0xa0] sm:$0xff]  ;;  %v38_v35 = vld [vmem:[%s490_s1 + $0xb0] sm:$0xff] }
   0x9   :  { %260 = vmatpush1.bf16.msra.mxu0 %v259_v14  ;;  %294 = vmatpush1.bf16.msra.mxu1 %v259_v14  ;;  %v273_v33 = vpack.c.bf16 %v39_v31, %v37_v30  ;;  %v41_v36 = vld [vmem:[%s490_s1 + $0xc8] sm:$0xff]  ;;  %v43_v37 = vld [vmem:[%s490_s1 + $0xd8] sm:$0xff]  ;;  %v275_v38 = vpack.c.bf16 %v38_v35, %v36_v34  ;;  %v40_v40 = vld [vmem:[%s490_s1 + $0xc0] sm:$0xff] }
   0xa   :  { %262 = vmatprep.subr.bf16.mxu0 %v261_v15  ;;  %287 = vmatprep.subr.bf16.mxu1 %v261_v15  ;;  %v277_v39 = vpack.c.bf16 %v43_v37, %v41_v36  ;;  %v42_v41 = vld [vmem:[%s490_s1 + $0xd0] sm:$0xff]  ;;  %v45_v42 = vld [vmem:[%s490_s1 + $0xe8] sm:$0xff]  ;;  %v47_v43 = vld [vmem:[%s490_s1 + $0xf8] sm:$0xff] }
   0xb   :  { %v279_v44 = vpack.c.bf16 %v42_v41, %v40_v40  ;;  %v281_v45 = vpack.c.bf16 %v47_v43, %v45_v42  ;;  %v44_v46 = vld [vmem:[%s490_s1 + $0xe0] sm:$0xff]  ;;  %v46_v47 = vld [vmem:[%s490_s1 + $0xf0] sm:$0xff]  ;;  %v15_v50 = vld [vmem:[%s491_s0 + $0x8] sm:$0xff] }
   0xc   :  { %v283_v48 = vpack.c.bf16 %v46_v47, %v44_v46  ;;  %v14_v49 = vld [vmem:[%s491_s0] sm:$0xff] }
   0xd   :  { %264 = vmatpush1.bf16.msra.mxu0 %v263_v20  ;;  %295 = vmatpush1.bf16.msra.mxu1 %v263_v20  ;;  %v48_v54 = vld [vmem:[%s492_s2] sm:$0x3] }
   0xe   :  { %266 = vmatprep.subr.bf16.mxu0 %v265_v21  ;;  %288 = vmatprep.subr.bf16.mxu1 %v265_v21  ;;  %v53_v56 = vrot.slane %v48_v54, %v52_v53  ;;  %v57_v57 = vrot.slane %v48_v54, %v56_v55 }
  0x11   :  { %268 = vmatpush1.bf16.msra.mxu0 %v267_v26  ;;  %296 = vmatpush1.bf16.msra.mxu1 %v267_v26 }
  0x12   :  { %270 = vmatprep.subr.bf16.mxu0 %v269_v27  ;;  %289 = vmatprep.subr.bf16.mxu1 %v269_v27 }
  0x15   :  { %272 = vmatpush1.bf16.msra.mxu0 %v271_v32  ;;  %297 = vmatpush1.bf16.msra.mxu1 %v271_v32 }
  0x16   :  { %274 = vmatprep.subr.bf16.mxu0 %v273_v33  ;;  %290 = vmatprep.subr.bf16.mxu1 %v273_v33 }
  0x19   :  { %276 = vmatpush1.bf16.msra.mxu0 %v275_v38  ;;  %298 = vmatpush1.bf16.msra.mxu1 %v275_v38 }
  0x1a   :  { %278 = vmatprep.subr.bf16.mxu0 %v277_v39  ;;  %291 = vmatprep.subr.bf16.mxu1 %v277_v39 }
  0x1d   :  { %280 = vmatpush1.bf16.msra.mxu0 %v279_v44  ;;  %299 = vmatpush1.bf16.msra.mxu1 %v279_v44 }
  0x1e   :  { %282 = vmatprep.subr.bf16.mxu0 %v281_v45  ;;  %292 = vmatprep.subr.bf16.mxu1 %v281_v45 }
  0x21   :  { %284 = vmatpush1.bf16.msra.mxu0 %v283_v48  ;;  %300 = vmatpush1.bf16.msra.mxu1 %v283_v48 }
  0x24   :  { %125 = vmatmul.mubr.f32.vlgmr.msra.gmra.mrb[0].mxu0 %v14_v49  ;;  %131 = vmatmul.mubr.f32.vlgmr.msra.gmra.mrb[0].mxu1 %v15_v50 }
  0xf7   :  { %v126_v58 = vpop.f32.mrb[0].mxu0  ;;  %v132_v59 = vpop.f32.mrb[0].mxu1 }
  0xf8   :  { %v446_v60 = vadd.f32 %v126_v58, %v53_v56  ;;  %v448_v61 = vadd.f32 %v132_v59, %v53_v56  ;;  %v128_v62 = vpop.f32.mrb[1].mxu0  ;;  %v134_v63 = vpop.f32.mrb[1].mxu1 }
  0xf9   :  { %v450_v0 = vadd.f32 %v128_v62, %v57_v57  ;;  %v452_v1 = vadd.f32 %v134_v63, %v57_v57 }
  0xfa   :  { %v455_v2 = vmul.f32 0.70710677, %v446_v60  ;;  %v458_v3 = vmul.f32 0.70710677, %v448_v61 }
  0xfb   :  { %v461_v4 = vmul.f32 0.70710677, %v450_v0  ;;  %v467_v8 = vmul.f32 0.70710677, %v452_v1 }
  0xfc   :  { %v153_v5 = vand.u32 2147483647, %v455_v2  ;;  %v155_v6 = vand.u32 2147483647, %v458_v3  ;;  %vm145_vm0 = vcmp.lt.f32.partialorder %v455_v2, 0.0  ;;  %vm147_vm1 = vcmp.lt.f32.partialorder %v458_v3, 0.0 }
  0xfd   :  { %v154_v7 = vand.u32 2147483647, %v461_v4  ;;  %v156_v14 = vand.u32 2147483647, %v467_v8  ;;  %vm146_vm2 = vcmp.lt.f32.partialorder %v461_v4, 0.0  ;;  %vm148_vm3 = vcmp.lt.f32.partialorder %v467_v8, 0.0 }
  0xfe   :  { %v157_v9 = vmul.f32 0.3275911, %v153_v5  ;;  %v159_v10 = vmul.f32 0.3275911, %v155_v6  ;;  %v209_v18 = vsub.f32 0.0, %v153_v5  ;;  %v211_v19 = vsub.f32 0.0, %v155_v6 }
  0xff   :  { %v158_v11 = vmul.f32 0.3275911, %v154_v7  ;;  %v160_v16 = vmul.f32 0.3275911, %v156_v14  ;;  %v210_v22 = vsub.f32 0.0, %v154_v7  ;;  %v212_v27 = vsub.f32 0.0, %v156_v14 }
 0x100   :  { %v161_v12 = vadd.f32 1.0, %v157_v9  ;;  %v163_v13 = vadd.f32 1.0, %v159_v10  ;;  %v213_v21 = vmul.f32 %v209_v18, %v153_v5  ;;  %v215_v25 = vmul.f32 %v211_v19, %v155_v6 }
 0x101   :  { %v162_v15 = vadd.f32 1.0, %v158_v11  ;;  %v164_v17 = vadd.f32 1.0, %v160_v16  ;;  %v214_v32 = vmul.f32 %v210_v22, %v154_v7  ;;  %v216_v38 = vmul.f32 %v212_v27, %v156_v14 }
 0x102   :  { %303 = vrcp.f32 %v161_v12  ;;  %v217_v30 = vmul.f32 1.442695, %v213_v21  ;;  %v221_v34 = vmul.f32 1.442695, %v215_v25  ;;  %v320_v19 = vmov 1.0  }
 0x103   :  { %305 = vrcp.f32 %v163_v13  ;;  %v219_v43 = vmul.f32 1.442695, %v214_v32  ;;  %v223_v48 = vmul.f32 1.442695, %v216_v38  ;;  %v149_v21 = vsel %vm145_vm0, -1.0, %v320_v19 }
 0x104   :  { %307 = vrcp.f32 %v162_v15  ;;  %v150_v32 = vsel %vm146_vm2, -1.0, %v320_v19  ;;  %v152_v4 = vsel %vm148_vm3, -1.0, %v320_v19  ;;  %v140_v8 = vmul.f32 0.5, %v452_v1 }
 0x105   :  { %309 = vrcp.f32 %v164_v17 }
 0x106   :  { %311 = vpow2.f32 %v217_v30  ;;  %v139_v30 = vmul.f32 0.5, %v448_v61 }
 0x107   :  { %313 = vpow2.f32 %v221_v34 }
 0x108   :  { %315 = vpow2.f32 %v219_v43 }
 0x109   :  { %317 = vpow2.f32 %v223_v48 }
 0x10c   :  { %v304_v20 = vpop.eup %303 }
 0x10d   :  { %v306_v23 = vpop.eup %305  ;;  %v173_v24 = vmul.f32 1.0614054, %v304_v20 }
 0x10e   :  { %v175_v26 = vmul.f32 1.0614054, %v306_v23  ;;  %v308_v29 = vpop.eup %307 }
 0x10f   :  { %v177_v28 = vadd.f32 -1.4531521, %v173_v24  ;;  %v174_v35 = vmul.f32 1.0614054, %v308_v29  ;;  %v310_v36 = vpop.eup %309 }
 0x110   :  { %v179_v31 = vadd.f32 -1.4531521, %v175_v26  ;;  %v176_v41 = vmul.f32 1.0614054, %v310_v36  ;;  %v312_v7 = vpop.eup %311  ;;  %v137_v26 = vmul.f32 0.5, %v446_v60  ;;  %v138_v60 = vmul.f32 0.5, %v450_v0 }
 0x111   :  { %v181_v33 = vmul.f32 %v304_v20, %v177_v28  ;;  %v178_v40 = vadd.f32 -1.4531521, %v174_v35  ;;  %v314_v10 = vpop.eup %313 }
 0x112   :  { %v183_v37 = vmul.f32 %v306_v23, %v179_v31  ;;  %v180_v46 = vadd.f32 -1.4531521, %v176_v41  ;;  %v316_v18 = vpop.eup %315 }
 0x113   :  { %v185_v39 = vadd.f32 1.4214138, %v181_v33  ;;  %v182_v45 = vmul.f32 %v308_v29, %v178_v40  ;;  %v318_v25 = vpop.eup %317 }
 0x114   :  { %v187_v42 = vadd.f32 1.4214138, %v183_v37  ;;  %v184_v51 = vmul.f32 %v310_v36, %v180_v46 }
 0x115   :  { %v189_v44 = vmul.f32 %v304_v20, %v185_v39  ;;  %v186_v50 = vadd.f32 1.4214138, %v182_v45 }
 0x116   :  { %v191_v47 = vmul.f32 %v306_v23, %v187_v42  ;;  %v188_v55 = vadd.f32 1.4214138, %v184_v51 }
 0x117   :  { %v193_v49 = vadd.f32 -0.28449672, %v189_v44  ;;  %v190_v54 = vmul.f32 %v308_v29, %v186_v50 }
 0x118   :  { %v195_v52 = vadd.f32 -0.28449672, %v191_v47  ;;  %v192_v59 = vmul.f32 %v310_v36, %v188_v55 }
 0x119   :  { %v197_v53 = vmul.f32 %v304_v20, %v193_v49  ;;  %v194_v58 = vadd.f32 -0.28449672, %v190_v54 }
 0x11a   :  { %v199_v56 = vmul.f32 %v306_v23, %v195_v52  ;;  %v196_v6 = vadd.f32 -0.28449672, %v192_v59 }
 0x11b   :  { %v201_v57 = vadd.f32 0.2548296, %v197_v53  ;;  %v198_v5 = vmul.f32 %v308_v29, %v194_v58 }
 0x11c   :  { %v203_v62 = vadd.f32 0.2548296, %v199_v56  ;;  %v200_v13 = vmul.f32 %v310_v36, %v196_v6 }
 0x11d   :  { %v205_v63 = vmul.f32 %v304_v20, %v201_v57  ;;  %v202_v12 = vadd.f32 0.2548296, %v198_v5  ;;  %v151_v20 = vsel %vm147_vm1, -1.0, %v320_v19 }
 0x11e   :  { %v207_v9 = vmul.f32 %v306_v23, %v203_v62  ;;  %v204_v17 = vadd.f32 0.2548296, %v200_v13 }
 0x11f   :  { %v225_v11 = vmul.f32 %v312_v7, %v205_v63  ;;  %v206_v16 = vmul.f32 %v308_v29, %v202_v12 }
 0x120   :  { %v227_v14 = vmul.f32 %v314_v10, %v207_v9  ;;  %v208_v23 = vmul.f32 %v310_v36, %v204_v17 }
 0x121   :  { %v229_v15 = vsub.f32 1.0, %v225_v11  ;;  %v226_v2 = vmul.f32 %v316_v18, %v206_v16 }
 0x122   :  { %v231_v22 = vsub.f32 1.0, %v227_v14  ;;  %v228_v29 = vmul.f32 %v318_v25, %v208_v23 }
 0x123   :  { %v233_v24 = vmul.f32 %v229_v15, %v149_v21  ;;  %v230_v28 = vsub.f32 1.0, %v226_v2 }
 0x124   :  { %v235_v3 = vmul.f32 %v231_v22, %v151_v20  ;;  %v232_v35 = vsub.f32 1.0, %v228_v29 }
 0x125   :  { %v237_v27 = vadd.f32 1.0, %v233_v24  ;;  %v234_v34 = vmul.f32 %v230_v28, %v150_v32 }
 0x126   :  { %v239_v31 = vadd.f32 1.0, %v235_v3  ;;  %v236_v38 = vmul.f32 %v232_v35, %v152_v4 }
 0x127   :  { %v241_v33 = vmul.f32 %v237_v27, %v137_v26  ;;  %v238_v36 = vadd.f32 1.0, %v234_v34 }
 0x128   :  { %v243_v37 = vmul.f32 %v239_v31, %v139_v30  ;;  %v240_v39 = vadd.f32 1.0, %v236_v38 }
 0x129   :  { %245 = vst [vmem:[%s493_s3] sm:$0xff] %v241_v33  ;;  %v242_v61 = vmul.f32 %v238_v36, %v138_v60 }
 0x12a   :  { %247 = vst [vmem:[%s493_s3 + $0x10] sm:$0xff] %v243_v37  ;;  %v244_v40 = vmul.f32 %v240_v39, %v140_v8 }
 0x12b   :  { %246 = vst [vmem:[%s493_s3 + $0x8] sm:$0xff] %v242_v61 }
 0x12c   :  { %248 = vst [vmem:[%s493_s3 + $0x18] sm:$0xff] %v244_v40 }

// kernel: vit_block_forward.11
= control target key start
LH: loop header
LB: loop body
LE: loop exit
PB: predicated region body
PF: predicated region fallthrough
CT: control target
= control target key end

     0   :  { %s429_s0 = inlined_call_operand.vmem [shape: f32[16,256], index: 0, kind: input, shape index: {}]   ;;  %s430_s1 = inlined_call_operand.vmem [shape: f32[256,128], index: 1, kind: input, shape index: {}]   ;;  %s431_s2 = inlined_call_operand.vmem [shape: f32[1,128], index: 2, kind: input, shape index: {}]   ;;  %s432_s3 = inlined_call_operand.vmem [shape: f32[16,128], index: 3, kind: input, shape index: {}]   ;;  %s433_s4 = inlined_call_operand.hbm [shape: f32[16,128], index: 4, kind: output, shape index: {}]  }
   0x1   :  { %v38_v0 = vld [vmem:[%s430_s1 + $0x80] sm:$0xff]  ;;  %v39_v1 = vld [vmem:[%s430_s1 + $0x88] sm:$0xff]  ;;  %v40_v5 = vld [vmem:[%s430_s1 + $0x90] sm:$0xff] }
   0x2   :  { %v22_v2 = vld [vmem:[%s430_s1] sm:$0xff]  ;;  %v197_v3 = vpack.c.bf16 %v39_v1, %v38_v0  ;;  %v23_v4 = vld [vmem:[%s430_s1 + $0x8] sm:$0xff]  ;;  %v41_v6 = vld [vmem:[%s430_s1 + $0x98] sm:$0xff] }
   0x3   :  { %v199_v7 = vpack.c.bf16 %v23_v4, %v22_v2  ;;  %v201_v8 = vpack.c.bf16 %v41_v6, %v40_v5  ;;  %v24_v9 = vld [vmem:[%s430_s1 + $0x10] sm:$0xff]  ;;  %v25_v10 = vld [vmem:[%s430_s1 + $0x18] sm:$0xff]  ;;  %v42_v11 = vld [vmem:[%s430_s1 + $0xa0] sm:$0xff] }
   0x4   :  { %198 = vmatprep.subr.bf16.mxu0 %v197_v3  ;;  %229 = vmatprep.subr.bf16.mxu1 %v197_v3  ;;  %v43_v12 = vld [vmem:[%s430_s1 + $0xa8] sm:$0xff]  ;;  %v203_v13 = vpack.c.bf16 %v25_v10, %v24_v9  ;;  %v26_v15 = vld [vmem:[%s430_s1 + $0x20] sm:$0xff]  ;;  %v44_v17 = vld [vmem:[%s430_s1 + $0xb0] sm:$0xff] }
   0x5   :  { %200 = vmatpush3.bf16.msra.mxu0 %v199_v7  ;;  %237 = vmatpush3.bf16.msra.mxu1 %v199_v7  ;;  %v205_v14 = vpack.c.bf16 %v43_v12, %v42_v11  ;;  %v27_v16 = vld [vmem:[%s430_s1 + $0x28] sm:$0xff]  ;;  %v45_v18 = vld [vmem:[%s430_s1 + $0xb8] sm:$0xff]  ;;  %v28_v21 = vld [vmem:[%s430_s1 + $0x30] sm:$0xff] }
   0x6   :  { %202 = vmatprep.subr.bf16.mxu0 %v201_v8  ;;  %230 = vmatprep.subr.bf16.mxu1 %v201_v8  ;;  %v207_v19 = vpack.c.bf16 %v27_v16, %v26_v15  ;;  %v209_v20 = vpack.c.bf16 %v45_v18, %v44_v17  ;;  %v29_v22 = vld [vmem:[%s430_s1 + $0x38] sm:$0xff]  ;;  %v46_v23 = vld [vmem:[%s430_s1 + $0xc0] sm:$0xff]  ;;  %v47_v24 = vld [vmem:[%s430_s1 + $0xc8] sm:$0xff] }
   0x7   :  { %v19_v25 = vld [vmem:[%s429_s0 + $0x8] sm:$0xff]  ;;  %v21_v26 = vld [vmem:[%s429_s0 + $0x18] sm:$0xff]  ;;  %v211_v27 = vpack.c.bf16 %v29_v22, %v28_v21 }
   0x8   :  { %125 = vmatprep.mubr.f32.mxu0 %v19_v25 }
   0x9   :  { %204 = vmatpush3.bf16.msra.mxu0 %v203_v13  ;;  %238 = vmatpush3.bf16.msra.mxu1 %v203_v13 }
   0xa   :  { %206 = vmatprep.subr.bf16.mxu0 %v205_v14  ;;  %231 = vmatprep.subr.bf16.mxu1 %v205_v14 }
   0xd   :  { %208 = vmatpush3.bf16.msra.mxu0 %v207_v19  ;;  %239 = vmatpush3.bf16.msra.mxu1 %v207_v19 }
   0xe   :  { %9 = vsyncpa [#allocation3], 0  ;;  %210 = vmatprep.subr.bf16.mxu0 %v209_v20  ;;  %232 = vmatprep.subr.bf16.mxu1 %v209_v20  ;;  %v213_v28 = vpack.c.bf16 %v47_v24, %v46_v23  ;;  %v30_v29 = vld [vmem:[%s430_s1 + $0x40] sm:$0xff]  ;;  %v31_v30 = vld [vmem:[%s430_s1 + $0x48] sm:$0xff]  ;;  %s272_s10 = smov [#allocation2]  }
   0xf   :  { %v48_v31 = vld [vmem:[%s430_s1 + $0xd0] sm:$0xff]  ;;  %v49_v32 = vld [vmem:[%s430_s1 + $0xd8] sm:$0xff]  ;;  %130 = vmatprep.mubr.f32.mxu1 %v21_v26  ;;  %v215_v33 = vpack.c.bf16 %v31_v30, %v30_v29  ;;  %v50_v37 = vld [vmem:[%s430_s1 + $0xe0] sm:$0xff]  ;;  %s147_s11 = sshll.u32 %s272_s10, 4  ;;  %s148_s11 = int_to_ptr.vmem [resolvable:$true] %s147_s11 }
  0x10   :  { %v217_v34 = vpack.c.bf16 %v49_v32, %v48_v31  ;;  %v32_v35 = vld [vmem:[%s430_s1 + $0x50] sm:$0xff]  ;;  %v33_v36 = vld [vmem:[%s430_s1 + $0x58] sm:$0xff]  ;;  %v51_v38 = vld [vmem:[%s430_s1 + $0xe8] sm:$0xff]  ;;  %p253_p1 = scmp.lt.s32.totalorder %s148_s11, %s148_s11 }
  0x11   :  { %212 = vmatpush3.bf16.msra.mxu0 %v211_v27  ;;  %240 = vmatpush3.bf16.msra.mxu1 %v211_v27  ;;  %v219_v39 = vpack.c.bf16 %v33_v36, %v32_v35  ;;  %v221_v40 = vpack.c.bf16 %v51_v38, %v50_v37  ;;  %v34_v41 = vld [vmem:[%s430_s1 + $0x60] sm:$0xff]  ;;  %v35_v42 = vld [vmem:[%s430_s1 + $0x68] sm:$0xff]  ;;  %v52_v43 = vld [vmem:[%s430_s1 + $0xf0] sm:$0xff] }
  0x12   :  { %214 = vmatprep.subr.bf16.mxu0 %v213_v28  ;;  %233 = vmatprep.subr.bf16.mxu1 %v213_v28  ;;  %v53_v44 = vld [vmem:[%s430_s1 + $0xf8] sm:$0xff]  ;;  %v223_v45 = vpack.c.bf16 %v35_v42, %v34_v41  ;;  %v36_v47 = vld [vmem:[%s430_s1 + $0x70] sm:$0xff]  ;;  %v18_v50 = vld [vmem:[%s429_s0] sm:$0xff] }
  0x13   :  { %v225_v46 = vpack.c.bf16 %v53_v44, %v52_v43  ;;  %v37_v48 = vld [vmem:[%s430_s1 + $0x78] sm:$0xff]  ;;  %v20_v51 = vld [vmem:[%s429_s0 + $0x10] sm:$0xff]  ;;  %v158_v54 = vld [vmem:[%s431_s2] ss:$0 sm:$0xff]  ;;  %s248_s2 = scalar_lea.vmem %s148_s11, 256 }
  0x14   :  { %v227_v49 = vpack.c.bf16 %v37_v48, %v36_v47  ;;  %v136_v59 = vld [vmem:[%s432_s3] sm:$0xff]  ;;  %v137_v60 = vld [vmem:[%s432_s3 + $0x8] sm:$0xff]  ;;  %p249_p0 = scmp.ne.s32.totalorder %s148_s11, %s248_s2  ;;  %p254_p2 = scmp.lt.s32.totalorder %s248_s2, %s248_s2 }
  0x15   :  { %216 = vmatpush3.bf16.msra.mxu0 %v215_v33  ;;  %241 = vmatpush3.bf16.msra.mxu1 %v215_v33 }
  0x16   :  { %218 = vmatprep.subr.bf16.mxu0 %v217_v34  ;;  %234 = vmatprep.subr.bf16.mxu1 %v217_v34  ;;  %p255_p3 = por %p254_p2, %p253_p1 }
  0x18   :  { %p256_p4 = pnand %p255_p3, %p249_p0 }
  0x19   :  { %220 = vmatpush3.bf16.msra.mxu0 %v219_v39  ;;  %242 = vmatpush3.bf16.msra.mxu1 %v219_v39 }
  0x1a   :  { %222 = vmatprep.subr.bf16.mxu0 %v221_v40  ;;  %235 = vmatprep.subr.bf16.mxu1 %v221_v40 }
  0x1d   :  { %224 = vmatpush3.bf16.msra.mxu0 %v223_v45  ;;  %243 = vmatpush3.bf16.msra.mxu1 %v223_v45 }
  0x1e   :  { %226 = vmatprep.subr.bf16.mxu0 %v225_v46  ;;  %236 = vmatprep.subr.bf16.mxu1 %v225_v46 }
  0x21   :  { %228 = vmatpush3.bf16.msra.mxu0 %v227_v49  ;;  %244 = vmatpush3.bf16.msra.mxu1 %v227_v49 }
  0x24   :  { %126 = vmatmul.mubr.f32.vlgmr.msra.gmra.mrb[0].mxu0 %v18_v50  ;;  %131 = vmatmul.mubr.f32.vlgmr.msra.gmra.mrb[0].mxu1 %v20_v51 }
  0xf7   :  { %v191_v52 = vpop.f32.mrb[0].mxu0  ;;  %v194_v53 = vpop.f32.mrb[0].mxu1 }
  0xf8   :  { %v192_v55 = vpop.f32.mrb[1].mxu0  ;;  %v195_v56 = vpop.f32.mrb[1].mxu1 }
  0xf9   :  { %v193_v57 = vadd.f32 %v192_v55, %v191_v52  ;;  %v196_v58 = vadd.f32 %v195_v56, %v194_v53 }
  0xfb   :  { %v128_v61 = vadd.f32 %v193_v57, %v158_v54  ;;  %v133_v62 = vadd.f32 %v196_v58, %v158_v54 }
  0xfd   :  { %v138_v63 = vadd.f32 %v136_v59, %v128_v61  ;;  %v139_v0 = vadd.f32 %v137_v60, %v133_v62 }
  0xff   :  { %140 = vst [vmem:[#allocation2] sm:$0xff] %v138_v63  ;;  %141 = vst [vmem:[#allocation2 + $0x8] sm:$0xff] %v139_v0 }
 0x100   :  { %259 = shalt.err (!%p256_p4)
}
 0x101   :  { %s260_s17 = scalar_lea.hbm %s433_s4, 256 }
 0x102   :  { %p261_p5 = scmp.ne.s32.totalorder %s433_s4, %s260_s17  ;;  %p264_p6 = scmp.lt.u32.totalorder %s260_s17, %s433_s4 }
 0x104   :  { %p266_p7 = pnand %p264_p6, %p261_p5 }
 0x106   :  { %269 = shalt.err (!%p266_p7)
}
 0x107   :  { %s273_s21 = smov 128   ;;  %s274_s22 = smov 8  }
 0x108   :  { %153 = dma.vmem_to_hbm [thread:$0]  %s148_s11, 256, %s433_s4, [#allocation3], %s273_s21, %s273_s21, %s274_s22  }
 0x109   :  { %270 = dma.done.wait [#allocation3], 256  }
 0x10a   :  { %271 = vsyncadd [#allocation3], 4294967040 }
 0x10b   :  { %157 = vsyncpa [#allocation3], 1 }

</bundles_post_ra>
